<compile_context>
chip_gen: v7x
topology: tpu7x:2x2x1
jax: 0.10.0
libtpu: 0.0.40
codegen_flags: <defaults>
</compile_context>

<pallas_src>
import jax
import jax.numpy as jnp
from jax import lax
from jax.experimental import pallas as pl
from jax.experimental.pallas import tpu as pltpu


# ----------------------------------------------------------------------------
# Helpers: tile-size selection
# ----------------------------------------------------------------------------
def _pick_time_chunk(T, max_chunk=32):
    """Largest divisor of T up to max_chunk (chunk of timesteps per kernel invocation)."""
    for c in range(min(T, max_chunk), 0, -1):
        if T % c == 0:
            return c
    return 1


def _pick_batch_tile(B):
    """Expose a 'parallel' batch axis (v7x second TensorCore) only when each half
    still fills full (8, ...) sublane tiles; otherwise keep a single batch block."""
    if B % 16 == 0:
        return B // 2
    return B


# ----------------------------------------------------------------------------
# GRU recurrence kernel (PyTorch gate order r, z, n):
#   r = sigmoid(gx_r + h W_hr^T)           gx_r = x W_ir^T + b_ir + b_hr   (precomputed)
#   z = sigmoid(gx_z + h W_hz^T)           gx_z = x W_iz^T + b_iz + b_hz   (precomputed)
#   n = tanh   (gx_n + r*(h W_hn^T + b_hn)) gx_n = x W_in^T + b_in         (precomputed)
#   h = (1 - z) * n + z * h
# ----------------------------------------------------------------------------
def gru_recurrence_kernel(gx_ref, whh_ref, bhn_ref, out_ref, hfin_ref, h_scratch):
    """One chunk of Tc timesteps for one batch tile.

    gx_ref   : (Tc, Bc, 3H) f32   precomputed gate inputs (r,z,n)
    whh_ref  : (H, 3H)      bf16  fused recurrent weights [W_hr^T | W_hz^T | W_hn^T]
    bhn_ref  : (1, H)       f32   recurrent n-gate bias (must stay inside r*(.))
    out_ref  : (Tc, Bc, H)  f32   per-timestep hidden outputs for this chunk
    hfin_ref : (Bc, H)      f32   final hidden state (written on last chunk only)
    h_scratch: (Bc, H)      f32   recurrent state, persists across time chunks
    """
    c = pl.program_id(1)                     # time-chunk index (sequential axis)

    @pl.when(c == 0)
    def _init():
        h_scratch[...] = jnp.zeros_like(h_scratch)

    Tc = gx_ref.shape[0]
    H = h_scratch.shape[1]

    whh = whh_ref[...]                       # grid-invariant, stays resident in VMEM
    bhn = bhn_ref[...]

    def step(t, h):
        gx = gx_ref[t]                       # (Bc, 3H) f32
        # single fused recurrent matmul per step (1 MXU op instead of 3),
        # bf16 operands with f32 accumulation; hidden state stays f32.
        gh = jnp.dot(h.astype(whh.dtype), whh,
                     preferred_element_type=jnp.float32)      # (Bc, 3H) f32
        r = jax.nn.sigmoid(gx[:, 0 * H:1 * H] + gh[:, 0 * H:1 * H])
        z = jax.nn.sigmoid(gx[:, 1 * H:2 * H] + gh[:, 1 * H:2 * H])
        n = jnp.tanh(gx[:, 2 * H:3 * H] + r * (gh[:, 2 * H:3 * H] + bhn))
        h_new = (1.0 - z) * n + z * h
        out_ref[t] = h_new                   # lands in this chunk's VMEM block;
        return h_new                         # one HBM writeback per chunk

    h_last = lax.fori_loop(0, Tc, step, h_scratch[...], unroll=True)
    h_scratch[...] = h_last

    @pl.when(c == pl.num_programs(1) - 1)
    def _final():
        hfin_ref[...] = h_last


def gru_layer(x, w_ih_t, w_hh_t, b_gx, b_hn):
    """One GRU layer over the full sequence.  x: (T, B, E) f32 -> (out (T,B,H), h_T (B,H))."""
    T, B, E = x.shape
    H = w_hh_t.shape[0]

    # ---- hoisted input projection: one large bf16 matmul over all T timesteps ----
    # (removes 3 of 6 matmuls from the serial recurrence; XLA handles this well)
    gx = (jnp.dot(x.reshape(T * B, E).astype(jnp.bfloat16), w_ih_t,
                  preferred_element_type=jnp.float32).reshape(T, B, 3 * H)
          + b_gx)                                              # (T, B, 3H) f32

    Tc = _pick_time_chunk(T)
    Bc = _pick_batch_tile(B)
    grid = (B // Bc, T // Tc)

    out, h_final = pl.pallas_call(
        gru_recurrence_kernel,
        out_shape=(
            jax.ShapeDtypeStruct((T, B, H), jnp.float32),
            jax.ShapeDtypeStruct((B, H), jnp.float32),
        ),
        grid_spec=pltpu.PrefetchScalarGridSpec(
            num_scalar_prefetch=0,
            grid=grid,
            in_specs=[
                pl.BlockSpec((Tc, Bc, 3 * H), lambda b, c: (c, b, 0)),  # gate inputs
                # grid-invariant fused recurrent weights + n-gate bias.
                # TODO(synk): on v7x (64 MiB VMEM) with large H, single-buffer these
                #             via pipeline_mode=pl.Buffered(1) and set vmem_limit_bytes.
                pl.BlockSpec((H, 3 * H), lambda b, c: (0, 0)),
                pl.BlockSpec((1, H), lambda b, c: (0, 0)),
            ],
            out_specs=[
                pl.BlockSpec((Tc, Bc, H), lambda b, c: (c, b, 0)),
                pl.BlockSpec((Bc, H), lambda b, c: (b, 0)),
            ],
            scratch_shapes=[pltpu.VMEM((Bc, H), jnp.float32)],
        ),
        compiler_params=pltpu.CompilerParams(
            # batch tiles are independent (megacore-parallel); the time axis is a
            # sequential recurrence.
            dimension_semantics=("parallel", "arbitrary")),
    )(gx, w_hh_t, b_hn)
    return out, h_final


# ----------------------------------------------------------------------------
# Parameter construction (deterministic, PyTorch-like shapes, pre-packed for the kernel)
# ----------------------------------------------------------------------------
def init_encoder_params(key, vocab_size, hidden_size, emb_size, layer_num):
    keys = jax.random.split(key, 1 + layer_num * 4)
    params = {}
    params["embedding"] = 0.1 * jax.random.normal(
        keys[0], (vocab_size, emb_size), dtype=jnp.float32)

    H = hidden_size
    layers = []
    for l in range(layer_num):
        in_size = emb_size if l == 0 else hidden_size
        k_ih, k_hh, k_bih, k_bhh = keys[1 + 4 * l: 1 + 4 * (l + 1)]
        # PyTorch stores weight_ih_l{l}: (3H, in), weight_hh_l{l}: (3H, H), gate order r,z,n
        w_ih = 0.1 * jax.random.normal(k_ih, (3 * H, in_size), dtype=jnp.float32)
        w_hh = 0.1 * jax.random.normal(k_hh, (3 * H, H), dtype=jnp.float32)
        b_ih = 0.1 * jax.random.normal(k_bih, (3 * H,), dtype=jnp.float32)
        b_hh = 0.1 * jax.random.normal(k_bhh, (3 * H,), dtype=jnp.float32)

        layer = {
            # transposed + fused so the kernel / hoisted projection do x @ W and h @ W,
            # weights stored in bf16 for the MXU (f32 accumulation in the kernel).
            "w_ih_t": w_ih.T.astype(jnp.bfloat16),            # (in, 3H)
            "w_hh_t": w_hh.T.astype(jnp.bfloat16),            # (H, 3H)
            # b_ir+b_hr and b_iz+b_hz fuse into the hoisted gate inputs; b_in goes there too.
            "b_gx": jnp.concatenate([
                b_ih[0 * H:1 * H] + b_hh[0 * H:1 * H],
                b_ih[1 * H:2 * H] + b_hh[1 * H:2 * H],
                b_ih[2 * H:3 * H],
            ]).reshape(1, 1, 3 * H),                          # (1, 1, 3H) f32
            # b_hn must stay inside r*(.) -> passed to the kernel separately.
            "b_hn": b_hh[2 * H:3 * H].reshape(1, H),          # (1, H) f32
        }
        layers.append(layer)
    params["layers"] = layers
    return params


# ----------------------------------------------------------------------------
# Forward pass mirroring encoder.forward
# ----------------------------------------------------------------------------
def encoder_forward(params, input_seq):
    # if 3D: collapse leading dims like input_seq.view(-1, input_seq.size(2))
    if input_seq.ndim == 3:
        input_seq = input_seq.reshape(-1, input_seq.shape[2])

    ids = input_seq.astype(jnp.int32)                      # (B, T)
    seq = jnp.take(params["embedding"], ids, axis=0)       # (B, T, E)  embedding gather (glue)
    seq = jnp.transpose(seq, (1, 0, 2))                    # (T, B, E)  time-major

    x = seq
    finals = []
    # TODO(synk): layers are run back-to-back (one pallas_call each); a fully fused
    #             multi-layer kernel would avoid the per-layer (T,B,H) HBM round-trip,
    #             but the hoisted input projection of layer l+1 needs layer l's full output.
    for layer in params["layers"]:
        x, h_T = gru_layer(x, layer["w_ih_t"], layer["w_hh_t"],
                           layer["b_gx"], layer["b_hn"])
        finals.append(h_T)
    # TODO(synk): inter-layer dropout is a no-op here (module default dropout=0)

    output = x                                             # (T, B, H)
    hidden = jnp.stack(finals, axis=0)                     # (layer_num, B, H)
    return output, hidden


if __name__ == "__main__":
    vocab_size, hidden_size, emb_size, layer_num = 50, 32, 32, 2
    batch, seq_len = 2, 8

    key = jax.random.PRNGKey(0)
    k_param, k_ids = jax.random.split(key)
    params = init_encoder_params(k_param, vocab_size, hidden_size, emb_size, layer_num)

    input_seq = jax.random.randint(k_ids, (batch, seq_len), 0, vocab_size, dtype=jnp.int32)

    output, hidden = jax.jit(encoder_forward)(params, input_seq)
    jax.block_until_ready((output, hidden))

    assert output.shape == (seq_len, batch, hidden_size)
    assert hidden.shape == (layer_num, batch, hidden_size)
    print("KERNEL_OK")
</pallas_src>

<mosaic_0001>
module attributes {stable_mosaic.version = 11 : i64} {
  func.func @gru_recurrence_kernel(%arg0: i32, %arg1: i32, %arg2: memref<8x2x96xf32, #tpu.memory_space<vmem>>, %arg3: memref<32x96xbf16, #tpu.memory_space<vmem>>, %arg4: memref<1x32xf32, #tpu.memory_space<vmem>>, %arg5: memref<8x2x32xf32, #tpu.memory_space<vmem>>, %arg6: memref<2x32xf32, #tpu.memory_space<vmem>>, %arg7: memref<2x32xf32, #tpu.memory_space<vmem>>) attributes {dimension_semantics = [#tpu.dimension_semantics<parallel>, #tpu.dimension_semantics<arbitrary>], iteration_bounds = array<i64: 1, 1>, scalar_prefetch = 0 : i64, scratch_operands = 1 : i64, tpu.core_type = #tpu.core_type<tc>, window_params = [{transform_indices = @transform_0, window_bounds = array<i64: 8, 2, 96>}, {pipeline_mode = #tpu.pipeline_mode<synchronous>, transform_indices = @transform_1, window_bounds = array<i64: 32, 96>}, {pipeline_mode = #tpu.pipeline_mode<synchronous>, transform_indices = @transform_2, window_bounds = array<i64: 1, 32>}, {transform_indices = @transform_3, window_bounds = array<i64: 8, 2, 32>}, {transform_indices = @transform_4, window_bounds = array<i64: 2, 32>}]} {
    %c0_i32 = arith.constant 0 : i32
    %0 = arith.cmpi eq, %arg1, %c0_i32 : i32
    %1 = arith.extui %0 : i1 to i32
    %c0_i32_0 = arith.constant 0 : i32
    %2 = arith.cmpi ne, %1, %c0_i32_0 : i32
    scf.if %2 {
      %cst_74 = arith.constant 0.000000e+00 : f32
      %306 = vector.broadcast %cst_74 : f32 to vector<2x32xf32>
      %c0_75 = arith.constant 0 : index
      %c0_76 = arith.constant 0 : index
      %307 = vector.load %arg7[%c0_75, %c0_76] : memref<2x32xf32, #tpu.memory_space<vmem>>, vector<2x32xf32>
      tpu.vector_store %arg7[%c0_75, %c0_76], %306 {strides = array<i32>} : memref<2x32xf32, #tpu.memory_space<vmem>>, vector<2x32xf32>,
    } else {
    }
    %c0 = arith.constant 0 : index
    %c0_1 = arith.constant 0 : index
    %3 = vector.load %arg3[%c0, %c0_1] : memref<32x96xbf16, #tpu.memory_space<vmem>>, vector<32x96xbf16>
    %c0_2 = arith.constant 0 : index
    %c0_3 = arith.constant 0 : index
    %4 = vector.load %arg4[%c0_2, %c0_3] : memref<1x32xf32, #tpu.memory_space<vmem>>, vector<1x32xf32>
    %c0_4 = arith.constant 0 : index
    %c0_5 = arith.constant 0 : index
    %5 = vector.load %arg7[%c0_4, %c0_5] : memref<2x32xf32, #tpu.memory_space<vmem>>, vector<2x32xf32>
    %c0_i32_6 = arith.constant 0 : i32
    %6 = arith.index_cast %c0_i32_6 : i32 to index
    %c0_7 = arith.constant 0 : index
    %c0_8 = arith.constant 0 : index
    %7 = vector.load %arg2[%6, %c0_7, %c0_8] : memref<8x2x96xf32, #tpu.memory_space<vmem>>, vector<1x2x96xf32>
    %8 = vector.shape_cast %7 : vector<1x2x96xf32> to vector<2x96xf32>
    %9 = arith.truncf %5 : vector<2x32xf32> to vector<2x32xbf16>
    %cst = arith.constant dense<0.000000e+00> : vector<2x96xf32>
    %10 = tpu.matmul %9, %3, %cst {dimension_numbers = #tpu.dot_dimension_numbers<[1], [0], [0], [1], [0, 0, 1, 1], [], []>} : vector<2x32xbf16>, vector<32x96xbf16>, vector<2x96xf32> -> vector<2x96xf32>
    %11 = vector.extract_strided_slice %8 {offsets = [0, 0], sizes = [2, 32], strides = [1, 1]} : vector<2x96xf32> to vector<2x32xf32>
    %12 = vector.extract_strided_slice %10 {offsets = [0, 0], sizes = [2, 32], strides = [1, 1]} : vector<2x96xf32> to vector<2x32xf32>
    %13 = arith.addf %11, %12 : vector<2x32xf32>
    %14 = arith.negf %13 : vector<2x32xf32>
    %15 = math.exp %14 : vector<2x32xf32>
    %cst_9 = arith.constant 1.000000e+00 : f32
    %16 = vector.broadcast %cst_9 : f32 to vector<2x32xf32>
    %17 = arith.addf %16, %15 : vector<2x32xf32>
    %18 = arith.divf %16, %17 : vector<2x32xf32>
    %19 = vector.extract_strided_slice %8 {offsets = [0, 32], sizes = [2, 32], strides = [1, 1]} : vector<2x96xf32> to vector<2x32xf32>
    %20 = vector.extract_strided_slice %10 {offsets = [0, 32], sizes = [2, 32], strides = [1, 1]} : vector<2x96xf32> to vector<2x32xf32>
    %21 = arith.addf %19, %20 : vector<2x32xf32>
    %22 = arith.negf %21 : vector<2x32xf32>
    %23 = math.exp %22 : vector<2x32xf32>
    %cst_10 = arith.constant 1.000000e+00 : f32
    %24 = vector.broadcast %cst_10 : f32 to vector<2x32xf32>
    %25 = arith.addf %24, %23 : vector<2x32xf32>
    %26 = arith.divf %24, %25 : vector<2x32xf32>
    %27 = vector.extract_strided_slice %8 {offsets = [0, 64], sizes = [2, 32], strides = [1, 1]} : vector<2x96xf32> to vector<2x32xf32>
    %28 = vector.extract_strided_slice %10 {offsets = [0, 64], sizes = [2, 32], strides = [1, 1]} : vector<2x96xf32> to vector<2x32xf32>
    %29 = vector.broadcast %4 : vector<1x32xf32> to vector<2x32xf32>
    %30 = arith.addf %28, %29 : vector<2x32xf32>
    %31 = arith.mulf %18, %30 : vector<2x32xf32>
    %32 = arith.addf %27, %31 : vector<2x32xf32>
    %33 = math.tanh %32 : vector<2x32xf32>
    %cst_11 = arith.constant 1.000000e+00 : f32
    %34 = vector.broadcast %cst_11 : f32 to vector<2x32xf32>
    %35 = arith.subf %34, %26 : vector<2x32xf32>
    %36 = arith.mulf %35, %33 : vector<2x32xf32>
    %37 = arith.mulf %26, %5 : vector<2x32xf32>
    %38 = arith.addf %36, %37 : vector<2x32xf32>
    %39 = arith.index_cast %c0_i32_6 : i32 to index
    %c0_12 = arith.constant 0 : index
    %c0_13 = arith.constant 0 : index
    %40 = vector.load %arg5[%39, %c0_12, %c0_13] : memref<8x2x32xf32, #tpu.memory_space<vmem>>, vector<1x2x32xf32>
    %41 = vector.shape_cast %40 : vector<1x2x32xf32> to vector<2x32xf32>
    %42 = vector.shape_cast %38 : vector<2x32xf32> to vector<1x2x32xf32>
    tpu.vector_store %arg5[%39, %c0_12, %c0_13], %42 {strides = array<i32>} : memref<8x2x32xf32, #tpu.memory_space<vmem>>, vector<1x2x32xf32>,
    %c1_i32 = arith.constant 1 : i32
    %43 = arith.index_cast %c1_i32 : i32 to index
    %c0_14 = arith.constant 0 : index
    %c0_15 = arith.constant 0 : index
    %44 = vector.load %arg2[%43, %c0_14, %c0_15] : memref<8x2x96xf32, #tpu.memory_space<vmem>>, vector<1x2x96xf32>
    %45 = vector.shape_cast %44 : vector<1x2x96xf32> to vector<2x96xf32>
    %46 = arith.truncf %38 : vector<2x32xf32> to vector<2x32xbf16>
    %cst_16 = arith.constant dense<0.000000e+00> : vector<2x96xf32>
    %47 = tpu.matmul %46, %3, %cst_16 {dimension_numbers = #tpu.dot_dimension_numbers<[1], [0], [0], [1], [0, 0, 1, 1], [], []>} : vector<2x32xbf16>, vector<32x96xbf16>, vector<2x96xf32> -> vector<2x96xf32>
    %48 = vector.extract_strided_slice %45 {offsets = [0, 0], sizes = [2, 32], strides = [1, 1]} : vector<2x96xf32> to vector<2x32xf32>
    %49 = vector.extract_strided_slice %47 {offsets = [0, 0], sizes = [2, 32], strides = [1, 1]} : vector<2x96xf32> to vector<2x32xf32>
    %50 = arith.addf %48, %49 : vector<2x32xf32>
    %51 = arith.negf %50 : vector<2x32xf32>
    %52 = math.exp %51 : vector<2x32xf32>
    %cst_17 = arith.constant 1.000000e+00 : f32
    %53 = vector.broadcast %cst_17 : f32 to vector<2x32xf32>
    %54 = arith.addf %53, %52 : vector<2x32xf32>
    %55 = arith.divf %53, %54 : vector<2x32xf32>
    %56 = vector.extract_strided_slice %45 {offsets = [0, 32], sizes = [2, 32], strides = [1, 1]} : vector<2x96xf32> to vector<2x32xf32>
    %57 = vector.extract_strided_slice %47 {offsets = [0, 32], sizes = [2, 32], strides = [1, 1]} : vector<2x96xf32> to vector<2x32xf32>
    %58 = arith.addf %56, %57 : vector<2x32xf32>
    %59 = arith.negf %58 : vector<2x32xf32>
    %60 = math.exp %59 : vector<2x32xf32>
    %cst_18 = arith.constant 1.000000e+00 : f32
    %61 = vector.broadcast %cst_18 : f32 to vector<2x32xf32>
    %62 = arith.addf %61, %60 : vector<2x32xf32>
    %63 = arith.divf %61, %62 : vector<2x32xf32>
    %64 = vector.extract_strided_slice %45 {offsets = [0, 64], sizes = [2, 32], strides = [1, 1]} : vector<2x96xf32> to vector<2x32xf32>
    %65 = vector.extract_strided_slice %47 {offsets = [0, 64], sizes = [2, 32], strides = [1, 1]} : vector<2x96xf32> to vector<2x32xf32>
    %66 = vector.broadcast %4 : vector<1x32xf32> to vector<2x32xf32>
    %67 = arith.addf %65, %66 : vector<2x32xf32>
    %68 = arith.mulf %55, %67 : vector<2x32xf32>
    %69 = arith.addf %64, %68 : vector<2x32xf32>
    %70 = math.tanh %69 : vector<2x32xf32>
    %cst_19 = arith.constant 1.000000e+00 : f32
    %71 = vector.broadcast %cst_19 : f32 to vector<2x32xf32>
    %72 = arith.subf %71, %63 : vector<2x32xf32>
    %73 = arith.mulf %72, %70 : vector<2x32xf32>
    %74 = arith.mulf %63, %38 : vector<2x32xf32>
    %75 = arith.addf %73, %74 : vector<2x32xf32>
    %76 = arith.index_cast %c1_i32 : i32 to index
    %c0_20 = arith.constant 0 : index
    %c0_21 = arith.constant 0 : index
    %77 = vector.load %arg5[%76, %c0_20, %c0_21] : memref<8x2x32xf32, #tpu.memory_space<vmem>>, vector<1x2x32xf32>
    %78 = vector.shape_cast %77 : vector<1x2x32xf32> to vector<2x32xf32>
    %79 = vector.shape_cast %75 : vector<2x32xf32> to vector<1x2x32xf32>
    tpu.vector_store %arg5[%76, %c0_20, %c0_21], %79 {strides = array<i32>} : memref<8x2x32xf32, #tpu.memory_space<vmem>>, vector<1x2x32xf32>,
    %c2_i32 = arith.constant 2 : i32
    %80 = arith.index_cast %c2_i32 : i32 to index
    %c0_22 = arith.constant 0 : index
    %c0_23 = arith.constant 0 : index
    %81 = vector.load %arg2[%80, %c0_22, %c0_23] : memref<8x2x96xf32, #tpu.memory_space<vmem>>, vector<1x2x96xf32>
    %82 = vector.shape_cast %81 : vector<1x2x96xf32> to vector<2x96xf32>
    %83 = arith.truncf %75 : vector<2x32xf32> to vector<2x32xbf16>
    %cst_24 = arith.constant dense<0.000000e+00> : vector<2x96xf32>
    %84 = tpu.matmul %83, %3, %cst_24 {dimension_numbers = #tpu.dot_dimension_numbers<[1], [0], [0], [1], [0, 0, 1, 1], [], []>} : vector<2x32xbf16>, vector<32x96xbf16>, vector<2x96xf32> -> vector<2x96xf32>
    %85 = vector.extract_strided_slice %82 {offsets = [0, 0], sizes = [2, 32], strides = [1, 1]} : vector<2x96xf32> to vector<2x32xf32>
    %86 = vector.extract_strided_slice %84 {offsets = [0, 0], sizes = [2, 32], strides = [1, 1]} : vector<2x96xf32> to vector<2x32xf32>
    %87 = arith.addf %85, %86 : vector<2x32xf32>
    %88 = arith.negf %87 : vector<2x32xf32>
    %89 = math.exp %88 : vector<2x32xf32>
    %cst_25 = arith.constant 1.000000e+00 : f32
    %90 = vector.broadcast %cst_25 : f32 to vector<2x32xf32>
    %91 = arith.addf %90, %89 : vector<2x32xf32>
    %92 = arith.divf %90, %91 : vector<2x32xf32>
    %93 = vector.extract_strided_slice %82 {offsets = [0, 32], sizes = [2, 32], strides = [1, 1]} : vector<2x96xf32> to vector<2x32xf32>
    %94 = vector.extract_strided_slice %84 {offsets = [0, 32], sizes = [2, 32], strides = [1, 1]} : vector<2x96xf32> to vector<2x32xf32>
    %95 = arith.addf %93, %94 : vector<2x32xf32>
    %96 = arith.negf %95 : vector<2x32xf32>
    %97 = math.exp %96 : vector<2x32xf32>
    %cst_26 = arith.constant 1.000000e+00 : f32
    %98 = vector.broadcast %cst_26 : f32 to vector<2x32xf32>
    %99 = arith.addf %98, %97 : vector<2x32xf32>
    %100 = arith.divf %98, %99 : vector<2x32xf32>
    %101 = vector.extract_strided_slice %82 {offsets = [0, 64], sizes = [2, 32], strides = [1, 1]} : vector<2x96xf32> to vector<2x32xf32>
    %102 = vector.extract_strided_slice %84 {offsets = [0, 64], sizes = [2, 32], strides = [1, 1]} : vector<2x96xf32> to vector<2x32xf32>
    %103 = vector.broadcast %4 : vector<1x32xf32> to vector<2x32xf32>
    %104 = arith.addf %102, %103 : vector<2x32xf32>
    %105 = arith.mulf %92, %104 : vector<2x32xf32>
    %106 = arith.addf %101, %105 : vector<2x32xf32>
    %107 = math.tanh %106 : vector<2x32xf32>
    %cst_27 = arith.constant 1.000000e+00 : f32
    %108 = vector.broadcast %cst_27 : f32 to vector<2x32xf32>
    %109 = arith.subf %108, %100 : vector<2x32xf32>
    %110 = arith.mulf %109, %107 : vector<2x32xf32>
    %111 = arith.mulf %100, %75 : vector<2x32xf32>
    %112 = arith.addf %110, %111 : vector<2x32xf32>
    %113 = arith.index_cast %c2_i32 : i32 to index
    %c0_28 = arith.constant 0 : index
    %c0_29 = arith.constant 0 : index
    %114 = vector.load %arg5[%113, %c0_28, %c0_29] : memref<8x2x32xf32, #tpu.memory_space<vmem>>, vector<1x2x32xf32>
    %115 = vector.shape_cast %114 : vector<1x2x32xf32> to vector<2x32xf32>
    %116 = vector.shape_cast %112 : vector<2x32xf32> to vector<1x2x32xf32>
    tpu.vector_store %arg5[%113, %c0_28, %c0_29], %116 {strides = array<i32>} : memref<8x2x32xf32, #tpu.memory_space<vmem>>, vector<1x2x32xf32>,
    %c3_i32 = arith.constant 3 : i32
    %117 = arith.index_cast %c3_i32 : i32 to index
    %c0_30 = arith.constant 0 : index
    %c0_31 = arith.constant 0 : index
    %118 = vector.load %arg2[%117, %c0_30, %c0_31] : memref<8x2x96xf32, #tpu.memory_space<vmem>>, vector<1x2x96xf32>
    %119 = vector.shape_cast %118 : vector<1x2x96xf32> to vector<2x96xf32>
    %120 = arith.truncf %112 : vector<2x32xf32> to vector<2x32xbf16>
    %cst_32 = arith.constant dense<0.000000e+00> : vector<2x96xf32>
    %121 = tpu.matmul %120, %3, %cst_32 {dimension_numbers = #tpu.dot_dimension_numbers<[1], [0], [0], [1], [0, 0, 1, 1], [], []>} : vector<2x32xbf16>, vector<32x96xbf16>, vector<2x96xf32> -> vector<2x96xf32>
    %122 = vector.extract_strided_slice %119 {offsets = [0, 0], sizes = [2, 32], strides = [1, 1]} : vector<2x96xf32> to vector<2x32xf32>
    %123 = vector.extract_strided_slice %121 {offsets = [0, 0], sizes = [2, 32], strides = [1, 1]} : vector<2x96xf32> to vector<2x32xf32>
    %124 = arith.addf %122, %123 : vector<2x32xf32>
    %125 = arith.negf %124 : vector<2x32xf32>
    %126 = math.exp %125 : vector<2x32xf32>
    %cst_33 = arith.constant 1.000000e+00 : f32
    %127 = vector.broadcast %cst_33 : f32 to vector<2x32xf32>
    %128 = arith.addf %127, %126 : vector<2x32xf32>
    %129 = arith.divf %127, %128 : vector<2x32xf32>
    %130 = vector.extract_strided_slice %119 {offsets = [0, 32], sizes = [2, 32], strides = [1, 1]} : vector<2x96xf32> to vector<2x32xf32>
    %131 = vector.extract_strided_slice %121 {offsets = [0, 32], sizes = [2, 32], strides = [1, 1]} : vector<2x96xf32> to vector<2x32xf32>
    %132 = arith.addf %130, %131 : vector<2x32xf32>
    %133 = arith.negf %132 : vector<2x32xf32>
    %134 = math.exp %133 : vector<2x32xf32>
    %cst_34 = arith.constant 1.000000e+00 : f32
    %135 = vector.broadcast %cst_34 : f32 to vector<2x32xf32>
    %136 = arith.addf %135, %134 : vector<2x32xf32>
    %137 = arith.divf %135, %136 : vector<2x32xf32>
    %138 = vector.extract_strided_slice %119 {offsets = [0, 64], sizes = [2, 32], strides = [1, 1]} : vector<2x96xf32> to vector<2x32xf32>
    %139 = vector.extract_strided_slice %121 {offsets = [0, 64], sizes = [2, 32], strides = [1, 1]} : vector<2x96xf32> to vector<2x32xf32>
    %140 = vector.broadcast %4 : vector<1x32xf32> to vector<2x32xf32>
    %141 = arith.addf %139, %140 : vector<2x32xf32>
    %142 = arith.mulf %129, %141 : vector<2x32xf32>
    %143 = arith.addf %138, %142 : vector<2x32xf32>
    %144 = math.tanh %143 : vector<2x32xf32>
    %cst_35 = arith.constant 1.000000e+00 : f32
    %145 = vector.broadcast %cst_35 : f32 to vector<2x32xf32>
    %146 = arith.subf %145, %137 : vector<2x32xf32>
    %147 = arith.mulf %146, %144 : vector<2x32xf32>
    %148 = arith.mulf %137, %112 : vector<2x32xf32>
    %149 = arith.addf %147, %148 : vector<2x32xf32>
    %150 = arith.index_cast %c3_i32 : i32 to index
    %c0_36 = arith.constant 0 : index
    %c0_37 = arith.constant 0 : index
    %151 = vector.load %arg5[%150, %c0_36, %c0_37] : memref<8x2x32xf32, #tpu.memory_space<vmem>>, vector<1x2x32xf32>
    %152 = vector.shape_cast %151 : vector<1x2x32xf32> to vector<2x32xf32>
    %153 = vector.shape_cast %149 : vector<2x32xf32> to vector<1x2x32xf32>
    tpu.vector_store %arg5[%150, %c0_36, %c0_37], %153 {strides = array<i32>} : memref<8x2x32xf32, #tpu.memory_space<vmem>>, vector<1x2x32xf32>,
    %c4_i32 = arith.constant 4 : i32
    %154 = arith.index_cast %c4_i32 : i32 to index
    %c0_38 = arith.constant 0 : index
    %c0_39 = arith.constant 0 : index
    %155 = vector.load %arg2[%154, %c0_38, %c0_39] : memref<8x2x96xf32, #tpu.memory_space<vmem>>, vector<1x2x96xf32>
    %156 = vector.shape_cast %155 : vector<1x2x96xf32> to vector<2x96xf32>
    %157 = arith.truncf %149 : vector<2x32xf32> to vector<2x32xbf16>
    %cst_40 = arith.constant dense<0.000000e+00> : vector<2x96xf32>
    %158 = tpu.matmul %157, %3, %cst_40 {dimension_numbers = #tpu.dot_dimension_numbers<[1], [0], [0], [1], [0, 0, 1, 1], [], []>} : vector<2x32xbf16>, vector<32x96xbf16>, vector<2x96xf32> -> vector<2x96xf32>
    %159 = vector.extract_strided_slice %156 {offsets = [0, 0], sizes = [2, 32], strides = [1, 1]} : vector<2x96xf32> to vector<2x32xf32>
    %160 = vector.extract_strided_slice %158 {offsets = [0, 0], sizes = [2, 32], strides = [1, 1]} : vector<2x96xf32> to vector<2x32xf32>
    %161 = arith.addf %159, %160 : vector<2x32xf32>
    %162 = arith.negf %161 : vector<2x32xf32>
    %163 = math.exp %162 : vector<2x32xf32>
    %cst_41 = arith.constant 1.000000e+00 : f32
    %164 = vector.broadcast %cst_41 : f32 to vector<2x32xf32>
    %165 = arith.addf %164, %163 : vector<2x32xf32>
    %166 = arith.divf %164, %165 : vector<2x32xf32>
    %167 = vector.extract_strided_slice %156 {offsets = [0, 32], sizes = [2, 32], strides = [1, 1]} : vector<2x96xf32> to vector<2x32xf32>
    %168 = vector.extract_strided_slice %158 {offsets = [0, 32], sizes = [2, 32], strides = [1, 1]} : vector<2x96xf32> to vector<2x32xf32>
    %169 = arith.addf %167, %168 : vector<2x32xf32>
    %170 = arith.negf %169 : vector<2x32xf32>
    %171 = math.exp %170 : vector<2x32xf32>
    %cst_42 = arith.constant 1.000000e+00 : f32
    %172 = vector.broadcast %cst_42 : f32 to vector<2x32xf32>
    %173 = arith.addf %172, %171 : vector<2x32xf32>
    %174 = arith.divf %172, %173 : vector<2x32xf32>
    %175 = vector.extract_strided_slice %156 {offsets = [0, 64], sizes = [2, 32], strides = [1, 1]} : vector<2x96xf32> to vector<2x32xf32>
    %176 = vector.extract_strided_slice %158 {offsets = [0, 64], sizes = [2, 32], strides = [1, 1]} : vector<2x96xf32> to vector<2x32xf32>
    %177 = vector.broadcast %4 : vector<1x32xf32> to vector<2x32xf32>
    %178 = arith.addf %176, %177 : vector<2x32xf32>
    %179 = arith.mulf %166, %178 : vector<2x32xf32>
    %180 = arith.addf %175, %179 : vector<2x32xf32>
    %181 = math.tanh %180 : vector<2x32xf32>
    %cst_43 = arith.constant 1.000000e+00 : f32
    %182 = vector.broadcast %cst_43 : f32 to vector<2x32xf32>
    %183 = arith.subf %182, %174 : vector<2x32xf32>
    %184 = arith.mulf %183, %181 : vector<2x32xf32>
    %185 = arith.mulf %174, %149 : vector<2x32xf32>
    %186 = arith.addf %184, %185 : vector<2x32xf32>
    %187 = arith.index_cast %c4_i32 : i32 to index
    %c0_44 = arith.constant 0 : index
    %c0_45 = arith.constant 0 : index
    %188 = vector.load %arg5[%187, %c0_44, %c0_45] : memref<8x2x32xf32, #tpu.memory_space<vmem>>, vector<1x2x32xf32>
    %189 = vector.shape_cast %188 : vector<1x2x32xf32> to vector<2x32xf32>
    %190 = vector.shape_cast %186 : vector<2x32xf32> to vector<1x2x32xf32>
    tpu.vector_store %arg5[%187, %c0_44, %c0_45], %190 {strides = array<i32>} : memref<8x2x32xf32, #tpu.memory_space<vmem>>, vector<1x2x32xf32>,
    %c5_i32 = arith.constant 5 : i32
    %191 = arith.index_cast %c5_i32 : i32 to index
    %c0_46 = arith.constant 0 : index
    %c0_47 = arith.constant 0 : index
    %192 = vector.load %arg2[%191, %c0_46, %c0_47] : memref<8x2x96xf32, #tpu.memory_space<vmem>>, vector<1x2x96xf32>
    %193 = vector.shape_cast %192 : vector<1x2x96xf32> to vector<2x96xf32>
    %194 = arith.truncf %186 : vector<2x32xf32> to vector<2x32xbf16>
    %cst_48 = arith.constant dense<0.000000e+00> : vector<2x96xf32>
    %195 = tpu.matmul %194, %3, %cst_48 {dimension_numbers = #tpu.dot_dimension_numbers<[1], [0], [0], [1], [0, 0, 1, 1], [], []>} : vector<2x32xbf16>, vector<32x96xbf16>, vector<2x96xf32> -> vector<2x96xf32>
    %196 = vector.extract_strided_slice %193 {offsets = [0, 0], sizes = [2, 32], strides = [1, 1]} : vector<2x96xf32> to vector<2x32xf32>
    %197 = vector.extract_strided_slice %195 {offsets = [0, 0], sizes = [2, 32], strides = [1, 1]} : vector<2x96xf32> to vector<2x32xf32>
    %198 = arith.addf %196, %197 : vector<2x32xf32>
    %199 = arith.negf %198 : vector<2x32xf32>
    %200 = math.exp %199 : vector<2x32xf32>
    %cst_49 = arith.constant 1.000000e+00 : f32
    %201 = vector.broadcast %cst_49 : f32 to vector<2x32xf32>
    %202 = arith.addf %201, %200 : vector<2x32xf32>
    %203 = arith.divf %201, %202 : vector<2x32xf32>
    %204 = vector.extract_strided_slice %193 {offsets = [0, 32], sizes = [2, 32], strides = [1, 1]} : vector<2x96xf32> to vector<2x32xf32>
    %205 = vector.extract_strided_slice %195 {offsets = [0, 32], sizes = [2, 32], strides = [1, 1]} : vector<2x96xf32> to vector<2x32xf32>
    %206 = arith.addf %204, %205 : vector<2x32xf32>
    %207 = arith.negf %206 : vector<2x32xf32>
    %208 = math.exp %207 : vector<2x32xf32>
    %cst_50 = arith.constant 1.000000e+00 : f32
    %209 = vector.broadcast %cst_50 : f32 to vector<2x32xf32>
    %210 = arith.addf %209, %208 : vector<2x32xf32>
    %211 = arith.divf %209, %210 : vector<2x32xf32>
    %212 = vector.extract_strided_slice %193 {offsets = [0, 64], sizes = [2, 32], strides = [1, 1]} : vector<2x96xf32> to vector<2x32xf32>
    %213 = vector.extract_strided_slice %195 {offsets = [0, 64], sizes = [2, 32], strides = [1, 1]} : vector<2x96xf32> to vector<2x32xf32>
    %214 = vector.broadcast %4 : vector<1x32xf32> to vector<2x32xf32>
    %215 = arith.addf %213, %214 : vector<2x32xf32>
    %216 = arith.mulf %203, %215 : vector<2x32xf32>
    %217 = arith.addf %212, %216 : vector<2x32xf32>
    %218 = math.tanh %217 : vector<2x32xf32>
    %cst_51 = arith.constant 1.000000e+00 : f32
    %219 = vector.broadcast %cst_51 : f32 to vector<2x32xf32>
    %220 = arith.subf %219, %211 : vector<2x32xf32>
    %221 = arith.mulf %220, %218 : vector<2x32xf32>
    %222 = arith.mulf %211, %186 : vector<2x32xf32>
    %223 = arith.addf %221, %222 : vector<2x32xf32>
    %224 = arith.index_cast %c5_i32 : i32 to index
    %c0_52 = arith.constant 0 : index
    %c0_53 = arith.constant 0 : index
    %225 = vector.load %arg5[%224, %c0_52, %c0_53] : memref<8x2x32xf32, #tpu.memory_space<vmem>>, vector<1x2x32xf32>
    %226 = vector.shape_cast %225 : vector<1x2x32xf32> to vector<2x32xf32>
    %227 = vector.shape_cast %223 : vector<2x32xf32> to vector<1x2x32xf32>
    tpu.vector_store %arg5[%224, %c0_52, %c0_53], %227 {strides = array<i32>} : memref<8x2x32xf32, #tpu.memory_space<vmem>>, vector<1x2x32xf32>,
    %c6_i32 = arith.constant 6 : i32
    %228 = arith.index_cast %c6_i32 : i32 to index
    %c0_54 = arith.constant 0 : index
    %c0_55 = arith.constant 0 : index
    %229 = vector.load %arg2[%228, %c0_54, %c0_55] : memref<8x2x96xf32, #tpu.memory_space<vmem>>, vector<1x2x96xf32>
    %230 = vector.shape_cast %229 : vector<1x2x96xf32> to vector<2x96xf32>
    %231 = arith.truncf %223 : vector<2x32xf32> to vector<2x32xbf16>
    %cst_56 = arith.constant dense<0.000000e+00> : vector<2x96xf32>
    %232 = tpu.matmul %231, %3, %cst_56 {dimension_numbers = #tpu.dot_dimension_numbers<[1], [0], [0], [1], [0, 0, 1, 1], [], []>} : vector<2x32xbf16>, vector<32x96xbf16>, vector<2x96xf32> -> vector<2x96xf32>
    %233 = vector.extract_strided_slice %230 {offsets = [0, 0], sizes = [2, 32], strides = [1, 1]} : vector<2x96xf32> to vector<2x32xf32>
    %234 = vector.extract_strided_slice %232 {offsets = [0, 0], sizes = [2, 32], strides = [1, 1]} : vector<2x96xf32> to vector<2x32xf32>
    %235 = arith.addf %233, %234 : vector<2x32xf32>
    %236 = arith.negf %235 : vector<2x32xf32>
    %237 = math.exp %236 : vector<2x32xf32>
    %cst_57 = arith.constant 1.000000e+00 : f32
    %238 = vector.broadcast %cst_57 : f32 to vector<2x32xf32>
    %239 = arith.addf %238, %237 : vector<2x32xf32>
    %240 = arith.divf %238, %239 : vector<2x32xf32>
    %241 = vector.extract_strided_slice %230 {offsets = [0, 32], sizes = [2, 32], strides = [1, 1]} : vector<2x96xf32> to vector<2x32xf32>
    %242 = vector.extract_strided_slice %232 {offsets = [0, 32], sizes = [2, 32], strides = [1, 1]} : vector<2x96xf32> to vector<2x32xf32>
    %243 = arith.addf %241, %242 : vector<2x32xf32>
    %244 = arith.negf %243 : vector<2x32xf32>
    %245 = math.exp %244 : vector<2x32xf32>
    %cst_58 = arith.constant 1.000000e+00 : f32
    %246 = vector.broadcast %cst_58 : f32 to vector<2x32xf32>
    %247 = arith.addf %246, %245 : vector<2x32xf32>
    %248 = arith.divf %246, %247 : vector<2x32xf32>
    %249 = vector.extract_strided_slice %230 {offsets = [0, 64], sizes = [2, 32], strides = [1, 1]} : vector<2x96xf32> to vector<2x32xf32>
    %250 = vector.extract_strided_slice %232 {offsets = [0, 64], sizes = [2, 32], strides = [1, 1]} : vector<2x96xf32> to vector<2x32xf32>
    %251 = vector.broadcast %4 : vector<1x32xf32> to vector<2x32xf32>
    %252 = arith.addf %250, %251 : vector<2x32xf32>
    %253 = arith.mulf %240, %252 : vector<2x32xf32>
    %254 = arith.addf %249, %253 : vector<2x32xf32>
    %255 = math.tanh %254 : vector<2x32xf32>
    %cst_59 = arith.constant 1.000000e+00 : f32
    %256 = vector.broadcast %cst_59 : f32 to vector<2x32xf32>
    %257 = arith.subf %256, %248 : vector<2x32xf32>
    %258 = arith.mulf %257, %255 : vector<2x32xf32>
    %259 = arith.mulf %248, %223 : vector<2x32xf32>
    %260 = arith.addf %258, %259 : vector<2x32xf32>
    %261 = arith.index_cast %c6_i32 : i32 to index
    %c0_60 = arith.constant 0 : index
    %c0_61 = arith.constant 0 : index
    %262 = vector.load %arg5[%261, %c0_60, %c0_61] : memref<8x2x32xf32, #tpu.memory_space<vmem>>, vector<1x2x32xf32>
    %263 = vector.shape_cast %262 : vector<1x2x32xf32> to vector<2x32xf32>
    %264 = vector.shape_cast %260 : vector<2x32xf32> to vector<1x2x32xf32>
    tpu.vector_store %arg5[%261, %c0_60, %c0_61], %264 {strides = array<i32>} : memref<8x2x32xf32, #tpu.memory_space<vmem>>, vector<1x2x32xf32>,
    %c7_i32 = arith.constant 7 : i32
    %265 = arith.index_cast %c7_i32 : i32 to index
    %c0_62 = arith.constant 0 : index
    %c0_63 = arith.constant 0 : index
    %266 = vector.load %arg2[%265, %c0_62, %c0_63] : memref<8x2x96xf32, #tpu.memory_space<vmem>>, vector<1x2x96xf32>
    %267 = vector.shape_cast %266 : vector<1x2x96xf32> to vector<2x96xf32>
    %268 = arith.truncf %260 : vector<2x32xf32> to vector<2x32xbf16>
    %cst_64 = arith.constant dense<0.000000e+00> : vector<2x96xf32>
    %269 = tpu.matmul %268, %3, %cst_64 {dimension_numbers = #tpu.dot_dimension_numbers<[1], [0], [0], [1], [0, 0, 1, 1], [], []>} : vector<2x32xbf16>, vector<32x96xbf16>, vector<2x96xf32> -> vector<2x96xf32>
    %270 = vector.extract_strided_slice %267 {offsets = [0, 0], sizes = [2, 32], strides = [1, 1]} : vector<2x96xf32> to vector<2x32xf32>
    %271 = vector.extract_strided_slice %269 {offsets = [0, 0], sizes = [2, 32], strides = [1, 1]} : vector<2x96xf32> to vector<2x32xf32>
    %272 = arith.addf %270, %271 : vector<2x32xf32>
    %273 = arith.negf %272 : vector<2x32xf32>
    %274 = math.exp %273 : vector<2x32xf32>
    %cst_65 = arith.constant 1.000000e+00 : f32
    %275 = vector.broadcast %cst_65 : f32 to vector<2x32xf32>
    %276 = arith.addf %275, %274 : vector<2x32xf32>
    %277 = arith.divf %275, %276 : vector<2x32xf32>
    %278 = vector.extract_strided_slice %267 {offsets = [0, 32], sizes = [2, 32], strides = [1, 1]} : vector<2x96xf32> to vector<2x32xf32>
    %279 = vector.extract_strided_slice %269 {offsets = [0, 32], sizes = [2, 32], strides = [1, 1]} : vector<2x96xf32> to vector<2x32xf32>
    %280 = arith.addf %278, %279 : vector<2x32xf32>
    %281 = arith.negf %280 : vector<2x32xf32>
    %282 = math.exp %281 : vector<2x32xf32>
    %cst_66 = arith.constant 1.000000e+00 : f32
    %283 = vector.broadcast %cst_66 : f32 to vector<2x32xf32>
    %284 = arith.addf %283, %282 : vector<2x32xf32>
    %285 = arith.divf %283, %284 : vector<2x32xf32>
    %286 = vector.extract_strided_slice %267 {offsets = [0, 64], sizes = [2, 32], strides = [1, 1]} : vector<2x96xf32> to vector<2x32xf32>
    %287 = vector.extract_strided_slice %269 {offsets = [0, 64], sizes = [2, 32], strides = [1, 1]} : vector<2x96xf32> to vector<2x32xf32>
    %288 = vector.broadcast %4 : vector<1x32xf32> to vector<2x32xf32>
    %289 = arith.addf %287, %288 : vector<2x32xf32>
    %290 = arith.mulf %277, %289 : vector<2x32xf32>
    %291 = arith.addf %286, %290 : vector<2x32xf32>
    %292 = math.tanh %291 : vector<2x32xf32>
    %cst_67 = arith.constant 1.000000e+00 : f32
    %293 = vector.broadcast %cst_67 : f32 to vector<2x32xf32>
    %294 = arith.subf %293, %285 : vector<2x32xf32>
    %295 = arith.mulf %294, %292 : vector<2x32xf32>
    %296 = arith.mulf %285, %260 : vector<2x32xf32>
    %297 = arith.addf %295, %296 : vector<2x32xf32>
    %298 = arith.index_cast %c7_i32 : i32 to index
    %c0_68 = arith.constant 0 : index
    %c0_69 = arith.constant 0 : index
    %299 = vector.load %arg5[%298, %c0_68, %c0_69] : memref<8x2x32xf32, #tpu.memory_space<vmem>>, vector<1x2x32xf32>
    %300 = vector.shape_cast %299 : vector<1x2x32xf32> to vector<2x32xf32>
    %301 = vector.shape_cast %297 : vector<2x32xf32> to vector<1x2x32xf32>
    tpu.vector_store %arg5[%298, %c0_68, %c0_69], %301 {strides = array<i32>} : memref<8x2x32xf32, #tpu.memory_space<vmem>>, vector<1x2x32xf32>,
    %c8_i32 = arith.constant 8 : i32
    %c0_70 = arith.constant 0 : index
    %c0_71 = arith.constant 0 : index
    %302 = vector.load %arg7[%c0_70, %c0_71] : memref<2x32xf32, #tpu.memory_space<vmem>>, vector<2x32xf32>
    tpu.vector_store %arg7[%c0_70, %c0_71], %297 {strides = array<i32>} : memref<2x32xf32, #tpu.memory_space<vmem>>, vector<2x32xf32>,
    %c0_i32_72 = arith.constant 0 : i32
    %303 = arith.cmpi eq, %arg1, %c0_i32_72 : i32
    %304 = arith.extui %303 : i1 to i32
    %c0_i32_73 = arith.constant 0 : i32
    %305 = arith.cmpi ne, %304, %c0_i32_73 : i32
    scf.if %305 {
      %c0_74 = arith.constant 0 : index
      %c0_75 = arith.constant 0 : index
      %306 = vector.load %arg6[%c0_74, %c0_75] : memref<2x32xf32, #tpu.memory_space<vmem>>, vector<2x32xf32>
      tpu.vector_store %arg6[%c0_74, %c0_75], %297 {strides = array<i32>} : memref<2x32xf32, #tpu.memory_space<vmem>>, vector<2x32xf32>,
    } else {
    }
    return
  }
  func.func @transform_0(%arg0: i32, %arg1: i32) -> (i32, i32, i32) {
    %c0_i32 = arith.constant 0 : i32
    %c0_i32_0 = arith.constant 0 : i32
    return %arg1, %arg0, %c0_i32 : i32, i32, i32
  }
  func.func @transform_1(%arg0: i32, %arg1: i32) -> (i32, i32) {
    %c0_i32 = arith.constant 0 : i32
    %c0_i32_0 = arith.constant 0 : i32
    %c0_i32_1 = arith.constant 0 : i32
    return %c0_i32, %c0_i32_0 : i32, i32
  }
  func.func @transform_2(%arg0: i32, %arg1: i32) -> (i32, i32) {
    %c0_i32 = arith.constant 0 : i32
    %c0_i32_0 = arith.constant 0 : i32
    %c0_i32_1 = arith.constant 0 : i32
    return %c0_i32, %c0_i32_0 : i32, i32
  }
  func.func @transform_3(%arg0: i32, %arg1: i32) -> (i32, i32, i32) {
    %c0_i32 = arith.constant 0 : i32
    %c0_i32_0 = arith.constant 0 : i32
    return %arg1, %arg0, %c0_i32 : i32, i32, i32
  }
  func.func @transform_4(%arg0: i32, %arg1: i32) -> (i32, i32) {
    %c0_i32 = arith.constant 0 : i32
    %c0_i32_0 = arith.constant 0 : i32
    return %arg0, %c0_i32 : i32, i32
  }
}

module attributes {stable_mosaic.version = 11 : i64} {
  func.func @gru_recurrence_kernel(%arg0: i32, %arg1: i32, %arg2: memref<8x2x96xf32, #tpu.memory_space<vmem>>, %arg3: memref<32x96xbf16, #tpu.memory_space<vmem>>, %arg4: memref<1x32xf32, #tpu.memory_space<vmem>>, %arg5: memref<8x2x32xf32, #tpu.memory_space<vmem>>, %arg6: memref<2x32xf32, #tpu.memory_space<vmem>>, %arg7: memref<2x32xf32, #tpu.memory_space<vmem>>) attributes {dimension_semantics = [#tpu.dimension_semantics<parallel>, #tpu.dimension_semantics<arbitrary>], iteration_bounds = array<i64: 1, 1>, scalar_prefetch = 0 : i64, scratch_operands = 1 : i64, tpu.core_type = #tpu.core_type<tc>, window_params = [{transform_indices = @transform_0, window_bounds = array<i64: 8, 2, 96>}, {pipeline_mode = #tpu.pipeline_mode<synchronous>, transform_indices = @transform_1, window_bounds = array<i64: 32, 96>}, {pipeline_mode = #tpu.pipeline_mode<synchronous>, transform_indices = @transform_2, window_bounds = array<i64: 1, 32>}, {transform_indices = @transform_3, window_bounds = array<i64: 8, 2, 32>}, {transform_indices = @transform_4, window_bounds = array<i64: 2, 32>}]} {
    %c0_i32 = arith.constant 0 : i32
    %0 = arith.cmpi eq, %arg1, %c0_i32 : i32
    %1 = arith.extui %0 : i1 to i32
    %c0_i32_0 = arith.constant 0 : i32
    %2 = arith.cmpi ne, %1, %c0_i32_0 : i32
    scf.if %2 {
      %cst_74 = arith.constant 0.000000e+00 : f32
      %306 = vector.broadcast %cst_74 : f32 to vector<2x32xf32>
      %c0_75 = arith.constant 0 : index
      %c0_76 = arith.constant 0 : index
      %307 = vector.load %arg7[%c0_75, %c0_76] : memref<2x32xf32, #tpu.memory_space<vmem>>, vector<2x32xf32>
      tpu.vector_store %arg7[%c0_75, %c0_76], %306 {strides = array<i32>} : memref<2x32xf32, #tpu.memory_space<vmem>>, vector<2x32xf32>,
    } else {
    }
    %c0 = arith.constant 0 : index
    %c0_1 = arith.constant 0 : index
    %3 = vector.load %arg3[%c0, %c0_1] : memref<32x96xbf16, #tpu.memory_space<vmem>>, vector<32x96xbf16>
    %c0_2 = arith.constant 0 : index
    %c0_3 = arith.constant 0 : index
    %4 = vector.load %arg4[%c0_2, %c0_3] : memref<1x32xf32, #tpu.memory_space<vmem>>, vector<1x32xf32>
    %c0_4 = arith.constant 0 : index
    %c0_5 = arith.constant 0 : index
    %5 = vector.load %arg7[%c0_4, %c0_5] : memref<2x32xf32, #tpu.memory_space<vmem>>, vector<2x32xf32>
    %c0_i32_6 = arith.constant 0 : i32
    %6 = arith.index_cast %c0_i32_6 : i32 to index
    %c0_7 = arith.constant 0 : index
    %c0_8 = arith.constant 0 : index
    %7 = vector.load %arg2[%6, %c0_7, %c0_8] : memref<8x2x96xf32, #tpu.memory_space<vmem>>, vector<1x2x96xf32>
    %8 = vector.shape_cast %7 : vector<1x2x96xf32> to vector<2x96xf32>
    %9 = arith.truncf %5 : vector<2x32xf32> to vector<2x32xbf16>
    %cst = arith.constant dense<0.000000e+00> : vector<2x96xf32>
    %10 = tpu.matmul %9, %3, %cst {dimension_numbers = #tpu.dot_dimension_numbers<[1], [0], [0], [1], [0, 0, 1, 1], [], []>} : vector<2x32xbf16>, vector<32x96xbf16>, vector<2x96xf32> -> vector<2x96xf32>
    %11 = vector.extract_strided_slice %8 {offsets = [0, 0], sizes = [2, 32], strides = [1, 1]} : vector<2x96xf32> to vector<2x32xf32>
    %12 = vector.extract_strided_slice %10 {offsets = [0, 0], sizes = [2, 32], strides = [1, 1]} : vector<2x96xf32> to vector<2x32xf32>
    %13 = arith.addf %11, %12 : vector<2x32xf32>
    %14 = arith.negf %13 : vector<2x32xf32>
    %15 = math.exp %14 : vector<2x32xf32>
    %cst_9 = arith.constant 1.000000e+00 : f32
    %16 = vector.broadcast %cst_9 : f32 to vector<2x32xf32>
    %17 = arith.addf %16, %15 : vector<2x32xf32>
    %18 = arith.divf %16, %17 : vector<2x32xf32>
    %19 = vector.extract_strided_slice %8 {offsets = [0, 32], sizes = [2, 32], strides = [1, 1]} : vector<2x96xf32> to vector<2x32xf32>
    %20 = vector.extract_strided_slice %10 {offsets = [0, 32], sizes = [2, 32], strides = [1, 1]} : vector<2x96xf32> to vector<2x32xf32>
    %21 = arith.addf %19, %20 : vector<2x32xf32>
    %22 = arith.negf %21 : vector<2x32xf32>
    %23 = math.exp %22 : vector<2x32xf32>
    %cst_10 = arith.constant 1.000000e+00 : f32
    %24 = vector.broadcast %cst_10 : f32 to vector<2x32xf32>
    %25 = arith.addf %24, %23 : vector<2x32xf32>
    %26 = arith.divf %24, %25 : vector<2x32xf32>
    %27 = vector.extract_strided_slice %8 {offsets = [0, 64], sizes = [2, 32], strides = [1, 1]} : vector<2x96xf32> to vector<2x32xf32>
    %28 = vector.extract_strided_slice %10 {offsets = [0, 64], sizes = [2, 32], strides = [1, 1]} : vector<2x96xf32> to vector<2x32xf32>
    %29 = vector.broadcast %4 : vector<1x32xf32> to vector<2x32xf32>
    %30 = arith.addf %28, %29 : vector<2x32xf32>
    %31 = arith.mulf %18, %30 : vector<2x32xf32>
    %32 = arith.addf %27, %31 : vector<2x32xf32>
    %33 = math.tanh %32 : vector<2x32xf32>
    %cst_11 = arith.constant 1.000000e+00 : f32
    %34 = vector.broadcast %cst_11 : f32 to vector<2x32xf32>
    %35 = arith.subf %34, %26 : vector<2x32xf32>
    %36 = arith.mulf %35, %33 : vector<2x32xf32>
    %37 = arith.mulf %26, %5 : vector<2x32xf32>
    %38 = arith.addf %36, %37 : vector<2x32xf32>
    %39 = arith.index_cast %c0_i32_6 : i32 to index
    %c0_12 = arith.constant 0 : index
    %c0_13 = arith.constant 0 : index
    %40 = vector.load %arg5[%39, %c0_12, %c0_13] : memref<8x2x32xf32, #tpu.memory_space<vmem>>, vector<1x2x32xf32>
    %41 = vector.shape_cast %40 : vector<1x2x32xf32> to vector<2x32xf32>
    %42 = vector.shape_cast %38 : vector<2x32xf32> to vector<1x2x32xf32>
    tpu.vector_store %arg5[%39, %c0_12, %c0_13], %42 {strides = array<i32>} : memref<8x2x32xf32, #tpu.memory_space<vmem>>, vector<1x2x32xf32>,
    %c1_i32 = arith.constant 1 : i32
    %43 = arith.index_cast %c1_i32 : i32 to index
    %c0_14 = arith.constant 0 : index
    %c0_15 = arith.constant 0 : index
    %44 = vector.load %arg2[%43, %c0_14, %c0_15] : memref<8x2x96xf32, #tpu.memory_space<vmem>>, vector<1x2x96xf32>
    %45 = vector.shape_cast %44 : vector<1x2x96xf32> to vector<2x96xf32>
    %46 = arith.truncf %38 : vector<2x32xf32> to vector<2x32xbf16>
    %cst_16 = arith.constant dense<0.000000e+00> : vector<2x96xf32>
    %47 = tpu.matmul %46, %3, %cst_16 {dimension_numbers = #tpu.dot_dimension_numbers<[1], [0], [0], [1], [0, 0, 1, 1], [], []>} : vector<2x32xbf16>, vector<32x96xbf16>, vector<2x96xf32> -> vector<2x96xf32>
    %48 = vector.extract_strided_slice %45 {offsets = [0, 0], sizes = [2, 32], strides = [1, 1]} : vector<2x96xf32> to vector<2x32xf32>
    %49 = vector.extract_strided_slice %47 {offsets = [0, 0], sizes = [2, 32], strides = [1, 1]} : vector<2x96xf32> to vector<2x32xf32>
    %50 = arith.addf %48, %49 : vector<2x32xf32>
    %51 = arith.negf %50 : vector<2x32xf32>
    %52 = math.exp %51 : vector<2x32xf32>
    %cst_17 = arith.constant 1.000000e+00 : f32
    %53 = vector.broadcast %cst_17 : f32 to vector<2x32xf32>
    %54 = arith.addf %53, %52 : vector<2x32xf32>
    %55 = arith.divf %53, %54 : vector<2x32xf32>
    %56 = vector.extract_strided_slice %45 {offsets = [0, 32], sizes = [2, 32], strides = [1, 1]} : vector<2x96xf32> to vector<2x32xf32>
    %57 = vector.extract_strided_slice %47 {offsets = [0, 32], sizes = [2, 32], strides = [1, 1]} : vector<2x96xf32> to vector<2x32xf32>
    %58 = arith.addf %56, %57 : vector<2x32xf32>
    %59 = arith.negf %58 : vector<2x32xf32>
    %60 = math.exp %59 : vector<2x32xf32>
    %cst_18 = arith.constant 1.000000e+00 : f32
    %61 = vector.broadcast %cst_18 : f32 to vector<2x32xf32>
    %62 = arith.addf %61, %60 : vector<2x32xf32>
    %63 = arith.divf %61, %62 : vector<2x32xf32>
    %64 = vector.extract_strided_slice %45 {offsets = [0, 64], sizes = [2, 32], strides = [1, 1]} : vector<2x96xf32> to vector<2x32xf32>
    %65 = vector.extract_strided_slice %47 {offsets = [0, 64], sizes = [2, 32], strides = [1, 1]} : vector<2x96xf32> to vector<2x32xf32>
    %66 = vector.broadcast %4 : vector<1x32xf32> to vector<2x32xf32>
    %67 = arith.addf %65, %66 : vector<2x32xf32>
    %68 = arith.mulf %55, %67 : vector<2x32xf32>
    %69 = arith.addf %64, %68 : vector<2x32xf32>
    %70 = math.tanh %69 : vector<2x32xf32>
    %cst_19 = arith.constant 1.000000e+00 : f32
    %71 = vector.broadcast %cst_19 : f32 to vector<2x32xf32>
    %72 = arith.subf %71, %63 : vector<2x32xf32>
    %73 = arith.mulf %72, %70 : vector<2x32xf32>
    %74 = arith.mulf %63, %38 : vector<2x32xf32>
    %75 = arith.addf %73, %74 : vector<2x32xf32>
    %76 = arith.index_cast %c1_i32 : i32 to index
    %c0_20 = arith.constant 0 : index
    %c0_21 = arith.constant 0 : index
    %77 = vector.load %arg5[%76, %c0_20, %c0_21] : memref<8x2x32xf32, #tpu.memory_space<vmem>>, vector<1x2x32xf32>
    %78 = vector.shape_cast %77 : vector<1x2x32xf32> to vector<2x32xf32>
    %79 = vector.shape_cast %75 : vector<2x32xf32> to vector<1x2x32xf32>
    tpu.vector_store %arg5[%76, %c0_20, %c0_21], %79 {strides = array<i32>} : memref<8x2x32xf32, #tpu.memory_space<vmem>>, vector<1x2x32xf32>,
    %c2_i32 = arith.constant 2 : i32
    %80 = arith.index_cast %c2_i32 : i32 to index
    %c0_22 = arith.constant 0 : index
    %c0_23 = arith.constant 0 : index
    %81 = vector.load %arg2[%80, %c0_22, %c0_23] : memref<8x2x96xf32, #tpu.memory_space<vmem>>, vector<1x2x96xf32>
    %82 = vector.shape_cast %81 : vector<1x2x96xf32> to vector<2x96xf32>
    %83 = arith.truncf %75 : vector<2x32xf32> to vector<2x32xbf16>
    %cst_24 = arith.constant dense<0.000000e+00> : vector<2x96xf32>
    %84 = tpu.matmul %83, %3, %cst_24 {dimension_numbers = #tpu.dot_dimension_numbers<[1], [0], [0], [1], [0, 0, 1, 1], [], []>} : vector<2x32xbf16>, vector<32x96xbf16>, vector<2x96xf32> -> vector<2x96xf32>
    %85 = vector.extract_strided_slice %82 {offsets = [0, 0], sizes = [2, 32], strides = [1, 1]} : vector<2x96xf32> to vector<2x32xf32>
    %86 = vector.extract_strided_slice %84 {offsets = [0, 0], sizes = [2, 32], strides = [1, 1]} : vector<2x96xf32> to vector<2x32xf32>
    %87 = arith.addf %85, %86 : vector<2x32xf32>
    %88 = arith.negf %87 : vector<2x32xf32>
    %89 = math.exp %88 : vector<2x32xf32>
    %cst_25 = arith.constant 1.000000e+00 : f32
    %90 = vector.broadcast %cst_25 : f32 to vector<2x32xf32>
    %91 = arith.addf %90, %89 : vector<2x32xf32>
    %92 = arith.divf %90, %91 : vector<2x32xf32>
    %93 = vector.extract_strided_slice %82 {offsets = [0, 32], sizes = [2, 32], strides = [1, 1]} : vector<2x96xf32> to vector<2x32xf32>
    %94 = vector.extract_strided_slice %84 {offsets = [0, 32], sizes = [2, 32], strides = [1, 1]} : vector<2x96xf32> to vector<2x32xf32>
    %95 = arith.addf %93, %94 : vector<2x32xf32>
    %96 = arith.negf %95 : vector<2x32xf32>
    %97 = math.exp %96 : vector<2x32xf32>
    %cst_26 = arith.constant 1.000000e+00 : f32
    %98 = vector.broadcast %cst_26 : f32 to vector<2x32xf32>
    %99 = arith.addf %98, %97 : vector<2x32xf32>
    %100 = arith.divf %98, %99 : vector<2x32xf32>
    %101 = vector.extract_strided_slice %82 {offsets = [0, 64], sizes = [2, 32], strides = [1, 1]} : vector<2x96xf32> to vector<2x32xf32>
    %102 = vector.extract_strided_slice %84 {offsets = [0, 64], sizes = [2, 32], strides = [1, 1]} : vector<2x96xf32> to vector<2x32xf32>
    %103 = vector.broadcast %4 : vector<1x32xf32> to vector<2x32xf32>
    %104 = arith.addf %102, %103 : vector<2x32xf32>
    %105 = arith.mulf %92, %104 : vector<2x32xf32>
    %106 = arith.addf %101, %105 : vector<2x32xf32>
    %107 = math.tanh %106 : vector<2x32xf32>
    %cst_27 = arith.constant 1.000000e+00 : f32
    %108 = vector.broadcast %cst_27 : f32 to vector<2x32xf32>
    %109 = arith.subf %108, %100 : vector<2x32xf32>
    %110 = arith.mulf %109, %107 : vector<2x32xf32>
    %111 = arith.mulf %100, %75 : vector<2x32xf32>
    %112 = arith.addf %110, %111 : vector<2x32xf32>
    %113 = arith.index_cast %c2_i32 : i32 to index
    %c0_28 = arith.constant 0 : index
    %c0_29 = arith.constant 0 : index
    %114 = vector.load %arg5[%113, %c0_28, %c0_29] : memref<8x2x32xf32, #tpu.memory_space<vmem>>, vector<1x2x32xf32>
    %115 = vector.shape_cast %114 : vector<1x2x32xf32> to vector<2x32xf32>
    %116 = vector.shape_cast %112 : vector<2x32xf32> to vector<1x2x32xf32>
    tpu.vector_store %arg5[%113, %c0_28, %c0_29], %116 {strides = array<i32>} : memref<8x2x32xf32, #tpu.memory_space<vmem>>, vector<1x2x32xf32>,
    %c3_i32 = arith.constant 3 : i32
    %117 = arith.index_cast %c3_i32 : i32 to index
    %c0_30 = arith.constant 0 : index
    %c0_31 = arith.constant 0 : index
    %118 = vector.load %arg2[%117, %c0_30, %c0_31] : memref<8x2x96xf32, #tpu.memory_space<vmem>>, vector<1x2x96xf32>
    %119 = vector.shape_cast %118 : vector<1x2x96xf32> to vector<2x96xf32>
    %120 = arith.truncf %112 : vector<2x32xf32> to vector<2x32xbf16>
    %cst_32 = arith.constant dense<0.000000e+00> : vector<2x96xf32>
    %121 = tpu.matmul %120, %3, %cst_32 {dimension_numbers = #tpu.dot_dimension_numbers<[1], [0], [0], [1], [0, 0, 1, 1], [], []>} : vector<2x32xbf16>, vector<32x96xbf16>, vector<2x96xf32> -> vector<2x96xf32>
    %122 = vector.extract_strided_slice %119 {offsets = [0, 0], sizes = [2, 32], strides = [1, 1]} : vector<2x96xf32> to vector<2x32xf32>
    %123 = vector.extract_strided_slice %121 {offsets = [0, 0], sizes = [2, 32], strides = [1, 1]} : vector<2x96xf32> to vector<2x32xf32>
    %124 = arith.addf %122, %123 : vector<2x32xf32>
    %125 = arith.negf %124 : vector<2x32xf32>
    %126 = math.exp %125 : vector<2x32xf32>
    %cst_33 = arith.constant 1.000000e+00 : f32
    %127 = vector.broadcast %cst_33 : f32 to vector<2x32xf32>
    %128 = arith.addf %127, %126 : vector<2x32xf32>
    %129 = arith.divf %127, %128 : vector<2x32xf32>
    %130 = vector.extract_strided_slice %119 {offsets = [0, 32], sizes = [2, 32], strides = [1, 1]} : vector<2x96xf32> to vector<2x32xf32>
    %131 = vector.extract_strided_slice %121 {offsets = [0, 32], sizes = [2, 32], strides = [1, 1]} : vector<2x96xf32> to vector<2x32xf32>
    %132 = arith.addf %130, %131 : vector<2x32xf32>
    %133 = arith.negf %132 : vector<2x32xf32>
    %134 = math.exp %133 : vector<2x32xf32>
    %cst_34 = arith.constant 1.000000e+00 : f32
    %135 = vector.broadcast %cst_34 : f32 to vector<2x32xf32>
    %136 = arith.addf %135, %134 : vector<2x32xf32>
    %137 = arith.divf %135, %136 : vector<2x32xf32>
    %138 = vector.extract_strided_slice %119 {offsets = [0, 64], sizes = [2, 32], strides = [1, 1]} : vector<2x96xf32> to vector<2x32xf32>
    %139 = vector.extract_strided_slice %121 {offsets = [0, 64], sizes = [2, 32], strides = [1, 1]} : vector<2x96xf32> to vector<2x32xf32>
    %140 = vector.broadcast %4 : vector<1x32xf32> to vector<2x32xf32>
    %141 = arith.addf %139, %140 : vector<2x32xf32>
    %142 = arith.mulf %129, %141 : vector<2x32xf32>
    %143 = arith.addf %138, %142 : vector<2x32xf32>
    %144 = math.tanh %143 : vector<2x32xf32>
    %cst_35 = arith.constant 1.000000e+00 : f32
    %145 = vector.broadcast %cst_35 : f32 to vector<2x32xf32>
    %146 = arith.subf %145, %137 : vector<2x32xf32>
    %147 = arith.mulf %146, %144 : vector<2x32xf32>
    %148 = arith.mulf %137, %112 : vector<2x32xf32>
    %149 = arith.addf %147, %148 : vector<2x32xf32>
    %150 = arith.index_cast %c3_i32 : i32 to index
    %c0_36 = arith.constant 0 : index
    %c0_37 = arith.constant 0 : index
    %151 = vector.load %arg5[%150, %c0_36, %c0_37] : memref<8x2x32xf32, #tpu.memory_space<vmem>>, vector<1x2x32xf32>
    %152 = vector.shape_cast %151 : vector<1x2x32xf32> to vector<2x32xf32>
    %153 = vector.shape_cast %149 : vector<2x32xf32> to vector<1x2x32xf32>
    tpu.vector_store %arg5[%150, %c0_36, %c0_37], %153 {strides = array<i32>} : memref<8x2x32xf32, #tpu.memory_space<vmem>>, vector<1x2x32xf32>,
    %c4_i32 = arith.constant 4 : i32
    %154 = arith.index_cast %c4_i32 : i32 to index
    %c0_38 = arith.constant 0 : index
    %c0_39 = arith.constant 0 : index
    %155 = vector.load %arg2[%154, %c0_38, %c0_39] : memref<8x2x96xf32, #tpu.memory_space<vmem>>, vector<1x2x96xf32>
    %156 = vector.shape_cast %155 : vector<1x2x96xf32> to vector<2x96xf32>
    %157 = arith.truncf %149 : vector<2x32xf32> to vector<2x32xbf16>
    %cst_40 = arith.constant dense<0.000000e+00> : vector<2x96xf32>
    %158 = tpu.matmul %157, %3, %cst_40 {dimension_numbers = #tpu.dot_dimension_numbers<[1], [0], [0], [1], [0, 0, 1, 1], [], []>} : vector<2x32xbf16>, vector<32x96xbf16>, vector<2x96xf32> -> vector<2x96xf32>
    %159 = vector.extract_strided_slice %156 {offsets = [0, 0], sizes = [2, 32], strides = [1, 1]} : vector<2x96xf32> to vector<2x32xf32>
    %160 = vector.extract_strided_slice %158 {offsets = [0, 0], sizes = [2, 32], strides = [1, 1]} : vector<2x96xf32> to vector<2x32xf32>
    %161 = arith.addf %159, %160 : vector<2x32xf32>
    %162 = arith.negf %161 : vector<2x32xf32>
    %163 = math.exp %162 : vector<2x32xf32>
    %cst_41 = arith.constant 1.000000e+00 : f32
    %164 = vector.broadcast %cst_41 : f32 to vector<2x32xf32>
    %165 = arith.addf %164, %163 : vector<2x32xf32>
    %166 = arith.divf %164, %165 : vector<2x32xf32>
    %167 = vector.extract_strided_slice %156 {offsets = [0, 32], sizes = [2, 32], strides = [1, 1]} : vector<2x96xf32> to vector<2x32xf32>
    %168 = vector.extract_strided_slice %158 {offsets = [0, 32], sizes = [2, 32], strides = [1, 1]} : vector<2x96xf32> to vector<2x32xf32>
    %169 = arith.addf %167, %168 : vector<2x32xf32>
    %170 = arith.negf %169 : vector<2x32xf32>
    %171 = math.exp %170 : vector<2x32xf32>
    %cst_42 = arith.constant 1.000000e+00 : f32
    %172 = vector.broadcast %cst_42 : f32 to vector<2x32xf32>
    %173 = arith.addf %172, %171 : vector<2x32xf32>
    %174 = arith.divf %172, %173 : vector<2x32xf32>
    %175 = vector.extract_strided_slice %156 {offsets = [0, 64], sizes = [2, 32], strides = [1, 1]} : vector<2x96xf32> to vector<2x32xf32>
    %176 = vector.extract_strided_slice %158 {offsets = [0, 64], sizes = [2, 32], strides = [1, 1]} : vector<2x96xf32> to vector<2x32xf32>
    %177 = vector.broadcast %4 : vector<1x32xf32> to vector<2x32xf32>
    %178 = arith.addf %176, %177 : vector<2x32xf32>
    %179 = arith.mulf %166, %178 : vector<2x32xf32>
    %180 = arith.addf %175, %179 : vector<2x32xf32>
    %181 = math.tanh %180 : vector<2x32xf32>
    %cst_43 = arith.constant 1.000000e+00 : f32
    %182 = vector.broadcast %cst_43 : f32 to vector<2x32xf32>
    %183 = arith.subf %182, %174 : vector<2x32xf32>
    %184 = arith.mulf %183, %181 : vector<2x32xf32>
    %185 = arith.mulf %174, %149 : vector<2x32xf32>
    %186 = arith.addf %184, %185 : vector<2x32xf32>
    %187 = arith.index_cast %c4_i32 : i32 to index
    %c0_44 = arith.constant 0 : index
    %c0_45 = arith.constant 0 : index
    %188 = vector.load %arg5[%187, %c0_44, %c0_45] : memref<8x2x32xf32, #tpu.memory_space<vmem>>, vector<1x2x32xf32>
    %189 = vector.shape_cast %188 : vector<1x2x32xf32> to vector<2x32xf32>
    %190 = vector.shape_cast %186 : vector<2x32xf32> to vector<1x2x32xf32>
    tpu.vector_store %arg5[%187, %c0_44, %c0_45], %190 {strides = array<i32>} : memref<8x2x32xf32, #tpu.memory_space<vmem>>, vector<1x2x32xf32>,
    %c5_i32 = arith.constant 5 : i32
    %191 = arith.index_cast %c5_i32 : i32 to index
    %c0_46 = arith.constant 0 : index
    %c0_47 = arith.constant 0 : index
    %192 = vector.load %arg2[%191, %c0_46, %c0_47] : memref<8x2x96xf32, #tpu.memory_space<vmem>>, vector<1x2x96xf32>
    %193 = vector.shape_cast %192 : vector<1x2x96xf32> to vector<2x96xf32>
    %194 = arith.truncf %186 : vector<2x32xf32> to vector<2x32xbf16>
    %cst_48 = arith.constant dense<0.000000e+00> : vector<2x96xf32>
    %195 = tpu.matmul %194, %3, %cst_48 {dimension_numbers = #tpu.dot_dimension_numbers<[1], [0], [0], [1], [0, 0, 1, 1], [], []>} : vector<2x32xbf16>, vector<32x96xbf16>, vector<2x96xf32> -> vector<2x96xf32>
    %196 = vector.extract_strided_slice %193 {offsets = [0, 0], sizes = [2, 32], strides = [1, 1]} : vector<2x96xf32> to vector<2x32xf32>
    %197 = vector.extract_strided_slice %195 {offsets = [0, 0], sizes = [2, 32], strides = [1, 1]} : vector<2x96xf32> to vector<2x32xf32>
    %198 = arith.addf %196, %197 : vector<2x32xf32>
    %199 = arith.negf %198 : vector<2x32xf32>
    %200 = math.exp %199 : vector<2x32xf32>
    %cst_49 = arith.constant 1.000000e+00 : f32
    %201 = vector.broadcast %cst_49 : f32 to vector<2x32xf32>
    %202 = arith.addf %201, %200 : vector<2x32xf32>
    %203 = arith.divf %201, %202 : vector<2x32xf32>
    %204 = vector.extract_strided_slice %193 {offsets = [0, 32], sizes = [2, 32], strides = [1, 1]} : vector<2x96xf32> to vector<2x32xf32>
    %205 = vector.extract_strided_slice %195 {offsets = [0, 32], sizes = [2, 32], strides = [1, 1]} : vector<2x96xf32> to vector<2x32xf32>
    %206 = arith.addf %204, %205 : vector<2x32xf32>
    %207 = arith.negf %206 : vector<2x32xf32>
    %208 = math.exp %207 : vector<2x32xf32>
    %cst_50 = arith.constant 1.000000e+00 : f32
    %209 = vector.broadcast %cst_50 : f32 to vector<2x32xf32>
    %210 = arith.addf %209, %208 : vector<2x32xf32>
    %211 = arith.divf %209, %210 : vector<2x32xf32>
    %212 = vector.extract_strided_slice %193 {offsets = [0, 64], sizes = [2, 32], strides = [1, 1]} : vector<2x96xf32> to vector<2x32xf32>
    %213 = vector.extract_strided_slice %195 {offsets = [0, 64], sizes = [2, 32], strides = [1, 1]} : vector<2x96xf32> to vector<2x32xf32>
    %214 = vector.broadcast %4 : vector<1x32xf32> to vector<2x32xf32>
    %215 = arith.addf %213, %214 : vector<2x32xf32>
    %216 = arith.mulf %203, %215 : vector<2x32xf32>
    %217 = arith.addf %212, %216 : vector<2x32xf32>
    %218 = math.tanh %217 : vector<2x32xf32>
    %cst_51 = arith.constant 1.000000e+00 : f32
    %219 = vector.broadcast %cst_51 : f32 to vector<2x32xf32>
    %220 = arith.subf %219, %211 : vector<2x32xf32>
    %221 = arith.mulf %220, %218 : vector<2x32xf32>
    %222 = arith.mulf %211, %186 : vector<2x32xf32>
    %223 = arith.addf %221, %222 : vector<2x32xf32>
    %224 = arith.index_cast %c5_i32 : i32 to index
    %c0_52 = arith.constant 0 : index
    %c0_53 = arith.constant 0 : index
    %225 = vector.load %arg5[%224, %c0_52, %c0_53] : memref<8x2x32xf32, #tpu.memory_space<vmem>>, vector<1x2x32xf32>
    %226 = vector.shape_cast %225 : vector<1x2x32xf32> to vector<2x32xf32>
    %227 = vector.shape_cast %223 : vector<2x32xf32> to vector<1x2x32xf32>
    tpu.vector_store %arg5[%224, %c0_52, %c0_53], %227 {strides = array<i32>} : memref<8x2x32xf32, #tpu.memory_space<vmem>>, vector<1x2x32xf32>,
    %c6_i32 = arith.constant 6 : i32
    %228 = arith.index_cast %c6_i32 : i32 to index
    %c0_54 = arith.constant 0 : index
    %c0_55 = arith.constant 0 : index
    %229 = vector.load %arg2[%228, %c0_54, %c0_55] : memref<8x2x96xf32, #tpu.memory_space<vmem>>, vector<1x2x96xf32>
    %230 = vector.shape_cast %229 : vector<1x2x96xf32> to vector<2x96xf32>
    %231 = arith.truncf %223 : vector<2x32xf32> to vector<2x32xbf16>
    %cst_56 = arith.constant dense<0.000000e+00> : vector<2x96xf32>
    %232 = tpu.matmul %231, %3, %cst_56 {dimension_numbers = #tpu.dot_dimension_numbers<[1], [0], [0], [1], [0, 0, 1, 1], [], []>} : vector<2x32xbf16>, vector<32x96xbf16>, vector<2x96xf32> -> vector<2x96xf32>
    %233 = vector.extract_strided_slice %230 {offsets = [0, 0], sizes = [2, 32], strides = [1, 1]} : vector<2x96xf32> to vector<2x32xf32>
    %234 = vector.extract_strided_slice %232 {offsets = [0, 0], sizes = [2, 32], strides = [1, 1]} : vector<2x96xf32> to vector<2x32xf32>
    %235 = arith.addf %233, %234 : vector<2x32xf32>
    %236 = arith.negf %235 : vector<2x32xf32>
    %237 = math.exp %236 : vector<2x32xf32>
    %cst_57 = arith.constant 1.000000e+00 : f32
    %238 = vector.broadcast %cst_57 : f32 to vector<2x32xf32>
    %239 = arith.addf %238, %237 : vector<2x32xf32>
    %240 = arith.divf %238, %239 : vector<2x32xf32>
    %241 = vector.extract_strided_slice %230 {offsets = [0, 32], sizes = [2, 32], strides = [1, 1]} : vector<2x96xf32> to vector<2x32xf32>
    %242 = vector.extract_strided_slice %232 {offsets = [0, 32], sizes = [2, 32], strides = [1, 1]} : vector<2x96xf32> to vector<2x32xf32>
    %243 = arith.addf %241, %242 : vector<2x32xf32>
    %244 = arith.negf %243 : vector<2x32xf32>
    %245 = math.exp %244 : vector<2x32xf32>
    %cst_58 = arith.constant 1.000000e+00 : f32
    %246 = vector.broadcast %cst_58 : f32 to vector<2x32xf32>
    %247 = arith.addf %246, %245 : vector<2x32xf32>
    %248 = arith.divf %246, %247 : vector<2x32xf32>
    %249 = vector.extract_strided_slice %230 {offsets = [0, 64], sizes = [2, 32], strides = [1, 1]} : vector<2x96xf32> to vector<2x32xf32>
    %250 = vector.extract_strided_slice %232 {offsets = [0, 64], sizes = [2, 32], strides = [1, 1]} : vector<2x96xf32> to vector<2x32xf32>
    %251 = vector.broadcast %4 : vector<1x32xf32> to vector<2x32xf32>
    %252 = arith.addf %250, %251 : vector<2x32xf32>
    %253 = arith.mulf %240, %252 : vector<2x32xf32>
    %254 = arith.addf %249, %253 : vector<2x32xf32>
    %255 = math.tanh %254 : vector<2x32xf32>
    %cst_59 = arith.constant 1.000000e+00 : f32
    %256 = vector.broadcast %cst_59 : f32 to vector<2x32xf32>
    %257 = arith.subf %256, %248 : vector<2x32xf32>
    %258 = arith.mulf %257, %255 : vector<2x32xf32>
    %259 = arith.mulf %248, %223 : vector<2x32xf32>
    %260 = arith.addf %258, %259 : vector<2x32xf32>
    %261 = arith.index_cast %c6_i32 : i32 to index
    %c0_60 = arith.constant 0 : index
    %c0_61 = arith.constant 0 : index
    %262 = vector.load %arg5[%261, %c0_60, %c0_61] : memref<8x2x32xf32, #tpu.memory_space<vmem>>, vector<1x2x32xf32>
    %263 = vector.shape_cast %262 : vector<1x2x32xf32> to vector<2x32xf32>
    %264 = vector.shape_cast %260 : vector<2x32xf32> to vector<1x2x32xf32>
    tpu.vector_store %arg5[%261, %c0_60, %c0_61], %264 {strides = array<i32>} : memref<8x2x32xf32, #tpu.memory_space<vmem>>, vector<1x2x32xf32>,
    %c7_i32 = arith.constant 7 : i32
    %265 = arith.index_cast %c7_i32 : i32 to index
    %c0_62 = arith.constant 0 : index
    %c0_63 = arith.constant 0 : index
    %266 = vector.load %arg2[%265, %c0_62, %c0_63] : memref<8x2x96xf32, #tpu.memory_space<vmem>>, vector<1x2x96xf32>
    %267 = vector.shape_cast %266 : vector<1x2x96xf32> to vector<2x96xf32>
    %268 = arith.truncf %260 : vector<2x32xf32> to vector<2x32xbf16>
    %cst_64 = arith.constant dense<0.000000e+00> : vector<2x96xf32>
    %269 = tpu.matmul %268, %3, %cst_64 {dimension_numbers = #tpu.dot_dimension_numbers<[1], [0], [0], [1], [0, 0, 1, 1], [], []>} : vector<2x32xbf16>, vector<32x96xbf16>, vector<2x96xf32> -> vector<2x96xf32>
    %270 = vector.extract_strided_slice %267 {offsets = [0, 0], sizes = [2, 32], strides = [1, 1]} : vector<2x96xf32> to vector<2x32xf32>
    %271 = vector.extract_strided_slice %269 {offsets = [0, 0], sizes = [2, 32], strides = [1, 1]} : vector<2x96xf32> to vector<2x32xf32>
    %272 = arith.addf %270, %271 : vector<2x32xf32>
    %273 = arith.negf %272 : vector<2x32xf32>
    %274 = math.exp %273 : vector<2x32xf32>
    %cst_65 = arith.constant 1.000000e+00 : f32
    %275 = vector.broadcast %cst_65 : f32 to vector<2x32xf32>
    %276 = arith.addf %275, %274 : vector<2x32xf32>
    %277 = arith.divf %275, %276 : vector<2x32xf32>
    %278 = vector.extract_strided_slice %267 {offsets = [0, 32], sizes = [2, 32], strides = [1, 1]} : vector<2x96xf32> to vector<2x32xf32>
    %279 = vector.extract_strided_slice %269 {offsets = [0, 32], sizes = [2, 32], strides = [1, 1]} : vector<2x96xf32> to vector<2x32xf32>
    %280 = arith.addf %278, %279 : vector<2x32xf32>
    %281 = arith.negf %280 : vector<2x32xf32>
    %282 = math.exp %281 : vector<2x32xf32>
    %cst_66 = arith.constant 1.000000e+00 : f32
    %283 = vector.broadcast %cst_66 : f32 to vector<2x32xf32>
    %284 = arith.addf %283, %282 : vector<2x32xf32>
    %285 = arith.divf %283, %284 : vector<2x32xf32>
    %286 = vector.extract_strided_slice %267 {offsets = [0, 64], sizes = [2, 32], strides = [1, 1]} : vector<2x96xf32> to vector<2x32xf32>
    %287 = vector.extract_strided_slice %269 {offsets = [0, 64], sizes = [2, 32], strides = [1, 1]} : vector<2x96xf32> to vector<2x32xf32>
    %288 = vector.broadcast %4 : vector<1x32xf32> to vector<2x32xf32>
    %289 = arith.addf %287, %288 : vector<2x32xf32>
    %290 = arith.mulf %277, %289 : vector<2x32xf32>
    %291 = arith.addf %286, %290 : vector<2x32xf32>
    %292 = math.tanh %291 : vector<2x32xf32>
    %cst_67 = arith.constant 1.000000e+00 : f32
    %293 = vector.broadcast %cst_67 : f32 to vector<2x32xf32>
    %294 = arith.subf %293, %285 : vector<2x32xf32>
    %295 = arith.mulf %294, %292 : vector<2x32xf32>
    %296 = arith.mulf %285, %260 : vector<2x32xf32>
    %297 = arith.addf %295, %296 : vector<2x32xf32>
    %298 = arith.index_cast %c7_i32 : i32 to index
    %c0_68 = arith.constant 0 : index
    %c0_69 = arith.constant 0 : index
    %299 = vector.load %arg5[%298, %c0_68, %c0_69] : memref<8x2x32xf32, #tpu.memory_space<vmem>>, vector<1x2x32xf32>
    %300 = vector.shape_cast %299 : vector<1x2x32xf32> to vector<2x32xf32>
    %301 = vector.shape_cast %297 : vector<2x32xf32> to vector<1x2x32xf32>
    tpu.vector_store %arg5[%298, %c0_68, %c0_69], %301 {strides = array<i32>} : memref<8x2x32xf32, #tpu.memory_space<vmem>>, vector<1x2x32xf32>,
    %c8_i32 = arith.constant 8 : i32
    %c0_70 = arith.constant 0 : index
    %c0_71 = arith.constant 0 : index
    %302 = vector.load %arg7[%c0_70, %c0_71] : memref<2x32xf32, #tpu.memory_space<vmem>>, vector<2x32xf32>
    tpu.vector_store %arg7[%c0_70, %c0_71], %297 {strides = array<i32>} : memref<2x32xf32, #tpu.memory_space<vmem>>, vector<2x32xf32>,
    %c0_i32_72 = arith.constant 0 : i32
    %303 = arith.cmpi eq, %arg1, %c0_i32_72 : i32
    %304 = arith.extui %303 : i1 to i32
    %c0_i32_73 = arith.constant 0 : i32
    %305 = arith.cmpi ne, %304, %c0_i32_73 : i32
    scf.if %305 {
      %c0_74 = arith.constant 0 : index
      %c0_75 = arith.constant 0 : index
      %306 = vector.load %arg6[%c0_74, %c0_75] : memref<2x32xf32, #tpu.memory_space<vmem>>, vector<2x32xf32>
      tpu.vector_store %arg6[%c0_74, %c0_75], %297 {strides = array<i32>} : memref<2x32xf32, #tpu.memory_space<vmem>>, vector<2x32xf32>,
    } else {
    }
    return
  }
  func.func @transform_0(%arg0: i32, %arg1: i32) -> (i32, i32, i32) {
    %c0_i32 = arith.constant 0 : i32
    %c0_i32_0 = arith.constant 0 : i32
    return %arg1, %arg0, %c0_i32 : i32, i32, i32
  }
  func.func @transform_1(%arg0: i32, %arg1: i32) -> (i32, i32) {
    %c0_i32 = arith.constant 0 : i32
    %c0_i32_0 = arith.constant 0 : i32
    %c0_i32_1 = arith.constant 0 : i32
    return %c0_i32, %c0_i32_0 : i32, i32
  }
  func.func @transform_2(%arg0: i32, %arg1: i32) -> (i32, i32) {
    %c0_i32 = arith.constant 0 : i32
    %c0_i32_0 = arith.constant 0 : i32
    %c0_i32_1 = arith.constant 0 : i32
    return %c0_i32, %c0_i32_0 : i32, i32
  }
  func.func @transform_3(%arg0: i32, %arg1: i32) -> (i32, i32, i32) {
    %c0_i32 = arith.constant 0 : i32
    %c0_i32_0 = arith.constant 0 : i32
    return %arg1, %arg0, %c0_i32 : i32, i32, i32
  }
  func.func @transform_4(%arg0: i32, %arg1: i32) -> (i32, i32) {
    %c0_i32 = arith.constant 0 : i32
    %c0_i32_0 = arith.constant 0 : i32
    return %arg0, %c0_i32 : i32, i32
  }
}

</mosaic_0001>

<bundles_post_ra>
// kernel: encoder_forward.3
= control target key start
LH: loop header
LB: loop body
LE: loop exit
PB: predicated region body
PF: predicated region fallthrough
CT: control target
= control target key end

     0   :  { %v927_v1 = vmov 0.0   ;;  %vm928_vm0 = vmmov 0   ;;  %vm22_vm1 = vcmask 254976   ;;  %s929_s21 = smov 64   ;;  %s1168_s0 = inlined_call_operand.vmem [shape: f32[8,2,96], index: 0, kind: input, shape index: {}]   ;;  %s1169_s1 = inlined_call_operand.vmem [shape: bf16[32,96], index: 1, kind: input, shape index: {}]   ;;  %s1170_s2 = inlined_call_operand.vmem [shape: f32[1,32], index: 2, kind: input, shape index: {}]   ;;  %s1171_s3 = inlined_call_operand.hbm [shape: f32[8,2,32], index: 3, kind: output, shape index: {0}]   ;;  %s1172_s4 = inlined_call_operand.vmem [shape: f32[2,32], index: 4, kind: output, shape index: {1}]  }
   0x1   :  { %v962_v0 = vld [vmem:[%s1169_s1] sm:$0xff]   ;;  %782 = vmatprep.subr.bf16.mxu0 %v927_v1  ;;  %790 = vmatprep.subr.bf16.mxu1 %v927_v1  ;;  %v970_v2 = vld [vmem:[%s1169_s1 + $0x8] sm:$0xff]   ;;  %23 = vst.msk [vmem:[#allocation2] sm:$0x3] %vm22_vm1, %v927_v1 }
   0x2   :  { %783 = vmatpush3.bf16.msra.mxu0 %v962_v0  ;;  %786 = vmatprep.mubr.msk.bf16.mxu0 %vm928_vm0, %v927_v1  ;;  %v736_v3 = vld [vmem:[%s1170_s2] ss:$0 sm:$0xff] }
   0x3   :  { %784 = vmatprep.subr.bf16.mxu0 %v927_v1  ;;  %100 = vrot.lane.b32.xlu0 %v736_v3, %s929_s21 }
   0x4   :  { %10 = vsyncpa [#allocation4], 0  ;;  %791 = vmatpush3.bf16.msra.mxu1 %v962_v0  ;;  %794 = vmatprep.mubr.msk.bf16.mxu1 %vm928_vm0, %v927_v1  ;;  %vm44_vm2 = vcmask 261120   ;;  %s930_s1 = smov 32   ;;  %v30_v12 = vld [vmem:[%s1168_s0] sm:$0x3] }
   0x5   :  { %792 = vmatprep.subr.bf16.mxu1 %v927_v1  ;;  %s931_s23 = smov 96   ;;  %v737_v36 = vld [vmem:[%s1168_s0 + $0x2] sm:$0x3]  ;;  %v740_v59 = vld [vmem:[%s1168_s0 + $0x4] sm:$0x3] }
   0x6   :  { %785 = vmatpush3.bf16.msra.mxu0 %v970_v2 }
   0x7   :  { %798 = vmatprep.subr.bf16.mxu0 %v927_v1 }
   0x8   :  { %793 = vmatpush3.bf16.msra.mxu1 %v970_v2  ;;  %v29_v4 = vld [vmem:[#allocation2] sm:$0x3] }
   0x9   :  { %806 = vmatprep.subr.bf16.mxu1 %v927_v1  ;;  %v31_v5 = vpack.c.bf16 %v29_v4, %v29_v4 }
   0xb   :  { %787 = vmatmul.mubr.msk.bf16.vlgmr.msra.gmra.mrb[0].mxu0 %vm44_vm2, %v31_v5 }
   0xc   :  { %799 = vmatpush3.bf16.msra.mxu0 %v962_v0  ;;  %802 = vmatprep.mubr.msk.bf16.mxu0 %vm928_vm0, %v927_v1 }
   0xd   :  { %800 = vmatprep.subr.bf16.mxu0 %v927_v1 }
  0x10   :  { %801 = vmatpush3.bf16.msra.mxu0 %v970_v2 }
  0x11   :  { %814 = vmatprep.subr.bf16.mxu0 %v927_v1 }
  0x75   :  { %v996_v6 = vpop.permute.xlu0 %100 }
  0xde   :  { %v82_v7 = vpop.f32.mrb[0].mxu0 }
  0xdf   :  { %v103_v8 = vadd.f32 %v996_v6, %v82_v7  ;;  %v788_v9 = vpop.f32.mrb[1].mxu0  ;;  %v88_v13 = vadd.f32 %v82_v7, %v30_v12 }
  0xe0   :  { %v85_v10 = vpop.f32.mrb[2].mxu0 }
  0xe1   :  { %105 = vrot.lane.b32.xlu0 %v103_v8, %s929_s21  ;;  %v789_v11 = vpop.f32.mrb[3].mxu0  ;;  %v735_v14 = vmul.f32 -1.442695, %v88_v13 }
  0xe3   :  { %855 = vpow2.f32 %v735_v14 }
  0xe5   :  { %122 = vrot.lane.b32.xlu0 %v29_v4, %s930_s1 }
  0xed   :  { %v856_v15 = vpop.eup %855 }
  0xee   :  { %v92_v16 = vadd.f32 1.0, %v856_v15 }
  0xf0   :  { %857 = vrcp.f32 %v92_v16 }
  0xfa   :  { %v858_v17 = vpop.eup %857 }
  0xfb   :  { %v115_v24 = vsub.f32 1.0, %v858_v17 }
 0x153   :  { %v106_v18 = vpop.permute.xlu0 %105 }
 0x154   :  { %v108_v19 = vmul.f32 %v858_v17, %v106_v18 }
 0x156   :  { %110 = vrot.lane.b32.xlu1 %v108_v19, %s929_s21 }
 0x157   :  { %v123_v23 = vpop.permute.xlu0 %122 }
 0x158   :  { %v125_v26 = vmul.f32 %v858_v17, %v123_v23 }
 0x1c8   :  { %v111_v20 = vpop.permute.xlu1 %110 }
 0x1c9   :  { %v113_v21 = vadd.f32 %v111_v20, %v30_v12 }
 0x1cb   :  { %859 = vtanh.f32 %v113_v21 }
 0x1d5   :  { %v860_v22 = vpop.eup %859 }
 0x1d6   :  { %117 = vrot.lane.b32.xlu1 %v860_v22, %s931_s23  ;;  %v743_v22 = vld [vmem:[%s1168_s0 + $0x6] sm:$0x3] }
 0x248   :  { %v118_v25 = vpop.permute.xlu1 %117 }
 0x249   :  { %v120_v27 = vmul.f32 %v118_v25, %v115_v24 }
 0x24b   :  { %v1006_v28 = vadd.f32 %v125_v26, %v120_v27 }
 0x24d   :  { %v135_v29 = vpack.c.bf16 %v1006_v28, %v1006_v28 }
 0x24f   :  { %137 = vrot.lane.b32.xlu1 %v135_v29, %s931_s23 }
 0x2c1   :  { %v138_v30 = vpop.permute.xlu1 %137 }
 0x2c2   :  { %795 = vmatmul.mubr.msk.bf16.vlgmr.msra.gmra.mrb[0].mxu1 %vm44_vm2, %v138_v30 }
 0x2c3   :  { %807 = vmatpush3.bf16.msra.mxu1 %v962_v0  ;;  %810 = vmatprep.mubr.msk.bf16.mxu1 %vm928_vm0, %v927_v1 }
 0x2c4   :  { %808 = vmatprep.subr.bf16.mxu1 %v927_v1 }
 0x2c7   :  { %809 = vmatpush3.bf16.msra.mxu1 %v970_v2 }
 0x2c8   :  { %822 = vmatprep.subr.bf16.mxu1 %v927_v1 }
 0x395   :  { %v176_v31 = vpop.f32.mrb[0].mxu1 }
 0x396   :  { %v189_v32 = vadd.f32 %v176_v31, %v996_v6  ;;  %v796_v33 = vpop.f32.mrb[1].mxu1  ;;  %v182_v37 = vadd.f32 %v737_v36, %v176_v31 }
 0x397   :  { %v179_v34 = vpop.f32.mrb[2].mxu1 }
 0x398   :  { %191 = vrot.lane.b32.xlu0 %v189_v32, %s929_s21  ;;  %v797_v35 = vpop.f32.mrb[3].mxu1  ;;  %v739_v38 = vmul.f32 -1.442695, %v182_v37 }
 0x39a   :  { %861 = vpow2.f32 %v739_v38 }
 0x3a4   :  { %v862_v39 = vpop.eup %861 }
 0x3a5   :  { %v186_v40 = vadd.f32 1.0, %v862_v39 }
 0x3a7   :  { %863 = vrcp.f32 %v186_v40 }
 0x3b1   :  { %v864_v41 = vpop.eup %863 }
 0x3b2   :  { %v201_v47 = vsub.f32 1.0, %v864_v41  ;;  %v207_v49 = vmul.f32 %v864_v41, %v1006_v28 }
 0x40a   :  { %v192_v42 = vpop.permute.xlu0 %191 }
 0x40b   :  { %v194_v43 = vmul.f32 %v864_v41, %v192_v42 }
 0x40d   :  { %196 = vrot.lane.b32.xlu1 %v194_v43, %s929_s21 }
 0x47f   :  { %v197_v44 = vpop.permute.xlu1 %196 }
 0x480   :  { %v199_v45 = vadd.f32 %v737_v36, %v197_v44 }
 0x482   :  { %865 = vtanh.f32 %v199_v45 }
 0x48c   :  { %v866_v46 = vpop.eup %865 }
 0x48d   :  { %203 = vrot.lane.b32.xlu0 %v866_v46, %s931_s23  ;;  %v746_v46 = vld [vmem:[%s1168_s0 + $0x8] sm:$0x3] }
 0x4ff   :  { %v204_v48 = vpop.permute.xlu0 %203 }
 0x500   :  { %v206_v50 = vmul.f32 %v204_v48, %v201_v47 }
 0x502   :  { %v1026_v51 = vadd.f32 %v207_v49, %v206_v50 }
 0x504   :  { %v217_v52 = vpack.c.bf16 %v1026_v51, %v1026_v51 }
 0x506   :  { %219 = vrot.lane.b32.xlu1 %v217_v52, %s931_s23 }
 0x578   :  { %v220_v53 = vpop.permute.xlu1 %219 }
 0x579   :  { %803 = vmatmul.mubr.msk.bf16.vlgmr.msra.gmra.mrb[4].mxu0 %vm44_vm2, %v220_v53 }
 0x57a   :  { %815 = vmatpush3.bf16.msra.mxu0 %v962_v0  ;;  %818 = vmatprep.mubr.msk.bf16.mxu0 %vm928_vm0, %v927_v1 }
 0x57b   :  { %816 = vmatprep.subr.bf16.mxu0 %v927_v1 }
 0x57e   :  { %817 = vmatpush3.bf16.msra.mxu0 %v970_v2 }
 0x57f   :  { %830 = vmatprep.subr.bf16.mxu0 %v927_v1 }
 0x64c   :  { %v258_v54 = vpop.f32.mrb[4].mxu0 }
 0x64d   :  { %v271_v55 = vadd.f32 %v258_v54, %v996_v6  ;;  %v804_v56 = vpop.f32.mrb[5].mxu0  ;;  %v264_v60 = vadd.f32 %v740_v59, %v258_v54 }
 0x64e   :  { %v261_v57 = vpop.f32.mrb[6].mxu0 }
 0x64f   :  { %273 = vrot.lane.b32.xlu0 %v271_v55, %s929_s21  ;;  %v805_v58 = vpop.f32.mrb[7].mxu0  ;;  %v742_v61 = vmul.f32 -1.442695, %v264_v60 }
 0x651   :  { %867 = vpow2.f32 %v742_v61 }
 0x65b   :  { %v868_v62 = vpop.eup %867 }
 0x65c   :  { %v268_v63 = vadd.f32 1.0, %v868_v62 }
 0x65e   :  { %869 = vrcp.f32 %v268_v63 }
 0x668   :  { %v870_v3 = vpop.eup %869 }
 0x669   :  { %v283_v10 = vsub.f32 1.0, %v870_v3  ;;  %v289_v12 = vmul.f32 %v870_v3, %v1026_v51 }
 0x6c1   :  { %v274_v4 = vpop.permute.xlu0 %273 }
 0x6c2   :  { %v276_v5 = vmul.f32 %v870_v3, %v274_v4 }
 0x6c4   :  { %278 = vrot.lane.b32.xlu1 %v276_v5, %s929_s21 }
 0x736   :  { %v279_v7 = vpop.permute.xlu1 %278 }
 0x737   :  { %v281_v8 = vadd.f32 %v740_v59, %v279_v7 }
 0x739   :  { %871 = vtanh.f32 %v281_v8 }
 0x743   :  { %v872_v9 = vpop.eup %871 }
 0x744   :  { %285 = vrot.lane.b32.xlu0 %v872_v9, %s931_s23 }
 0x7b6   :  { %v286_v11 = vpop.permute.xlu0 %285 }
 0x7b7   :  { %v288_v13 = vmul.f32 %v286_v11, %v283_v10  ;;  %v749_v10 = vld [vmem:[%s1168_s0 + $0xa] sm:$0x3] }
 0x7b9   :  { %v1046_v14 = vadd.f32 %v289_v12, %v288_v13 }
 0x7bb   :  { %v299_v15 = vpack.c.bf16 %v1046_v14, %v1046_v14 }
 0x7bd   :  { %301 = vrot.lane.b32.xlu1 %v299_v15, %s931_s23 }
 0x82f   :  { %v302_v16 = vpop.permute.xlu1 %301 }
 0x830   :  { %811 = vmatmul.mubr.msk.bf16.vlgmr.msra.gmra.mrb[4].mxu1 %vm44_vm2, %v302_v16 }
 0x831   :  { %823 = vmatpush3.bf16.msra.mxu1 %v962_v0  ;;  %826 = vmatprep.mubr.msk.bf16.mxu1 %vm928_vm0, %v927_v1 }
 0x832   :  { %824 = vmatprep.subr.bf16.mxu1 %v927_v1 }
 0x835   :  { %825 = vmatpush3.bf16.msra.mxu1 %v970_v2 }
 0x836   :  { %838 = vmatprep.subr.bf16.mxu1 %v927_v1 }
 0x903   :  { %v340_v17 = vpop.f32.mrb[4].mxu1 }
 0x904   :  { %v353_v18 = vadd.f32 %v340_v17, %v996_v6  ;;  %v812_v19 = vpop.f32.mrb[5].mxu1  ;;  %v346_v23 = vadd.f32 %v743_v22, %v340_v17 }
 0x905   :  { %v343_v20 = vpop.f32.mrb[6].mxu1 }
 0x906   :  { %355 = vrot.lane.b32.xlu0 %v353_v18, %s929_s21  ;;  %v813_v21 = vpop.f32.mrb[7].mxu1  ;;  %v745_v24 = vmul.f32 -1.442695, %v346_v23 }
 0x908   :  { %873 = vpow2.f32 %v745_v24 }
 0x912   :  { %v874_v25 = vpop.eup %873 }
 0x913   :  { %v350_v26 = vadd.f32 1.0, %v874_v25 }
 0x915   :  { %875 = vrcp.f32 %v350_v26 }
 0x91f   :  { %v876_v27 = vpop.eup %875 }
 0x920   :  { %v365_v34 = vsub.f32 1.0, %v876_v27  ;;  %v371_v36 = vmul.f32 %v876_v27, %v1046_v14 }
 0x978   :  { %v356_v29 = vpop.permute.xlu0 %355 }
 0x979   :  { %v358_v30 = vmul.f32 %v876_v27, %v356_v29 }
 0x97b   :  { %360 = vrot.lane.b32.xlu1 %v358_v30, %s929_s21 }
 0x9ed   :  { %v361_v31 = vpop.permute.xlu1 %360 }
 0x9ee   :  { %v363_v32 = vadd.f32 %v743_v22, %v361_v31 }
 0x9f0   :  { %877 = vtanh.f32 %v363_v32  ;;  %v752_v32 = vld [vmem:[%s1168_s0 + $0xc] sm:$0x3] }
 0x9fa   :  { %v878_v33 = vpop.eup %877 }
 0x9fb   :  { %367 = vrot.lane.b32.xlu0 %v878_v33, %s931_s23 }
 0xa6d   :  { %v368_v35 = vpop.permute.xlu0 %367 }
 0xa6e   :  { %v370_v37 = vmul.f32 %v368_v35, %v365_v34 }
 0xa70   :  { %v1066_v38 = vadd.f32 %v371_v36, %v370_v37 }
 0xa72   :  { %v381_v39 = vpack.c.bf16 %v1066_v38, %v1066_v38 }
 0xa74   :  { %383 = vrot.lane.b32.xlu1 %v381_v39, %s931_s23 }
 0xae6   :  { %v384_v40 = vpop.permute.xlu1 %383 }
 0xae7   :  { %819 = vmatmul.mubr.msk.bf16.vlgmr.msra.gmra.mrb[8].mxu0 %vm44_vm2, %v384_v40 }
 0xae8   :  { %831 = vmatpush3.bf16.msra.mxu0 %v962_v0  ;;  %834 = vmatprep.mubr.msk.bf16.mxu0 %vm928_vm0, %v927_v1 }
 0xae9   :  { %832 = vmatprep.subr.bf16.mxu0 %v927_v1 }
 0xaec   :  { %833 = vmatpush3.bf16.msra.mxu0 %v970_v2 }
 0xbba   :  { %v422_v41 = vpop.f32.mrb[8].mxu0 }
 0xbbb   :  { %v435_v42 = vadd.f32 %v422_v41, %v996_v6  ;;  %v820_v43 = vpop.f32.mrb[9].mxu0  ;;  %v428_v47 = vadd.f32 %v746_v46, %v422_v41 }
 0xbbc   :  { %v425_v44 = vpop.f32.mrb[10].mxu0 }
 0xbbd   :  { %437 = vrot.lane.b32.xlu0 %v435_v42, %s929_s21  ;;  %v821_v45 = vpop.f32.mrb[11].mxu0  ;;  %v748_v48 = vmul.f32 -1.442695, %v428_v47 }
 0xbbf   :  { %879 = vpow2.f32 %v748_v48 }
 0xbc9   :  { %v880_v49 = vpop.eup %879 }
 0xbca   :  { %v432_v50 = vadd.f32 1.0, %v880_v49 }
 0xbcc   :  { %881 = vrcp.f32 %v432_v50 }
 0xbd6   :  { %v882_v52 = vpop.eup %881 }
 0xbd7   :  { %v447_v58 = vsub.f32 1.0, %v882_v52  ;;  %v453_v60 = vmul.f32 %v882_v52, %v1066_v38 }
 0xc2f   :  { %v438_v53 = vpop.permute.xlu0 %437 }
 0xc30   :  { %v440_v54 = vmul.f32 %v882_v52, %v438_v53 }
 0xc32   :  { %442 = vrot.lane.b32.xlu1 %v440_v54, %s929_s21 }
 0xca4   :  { %v443_v55 = vpop.permute.xlu1 %442 }
 0xca5   :  { %v445_v56 = vadd.f32 %v746_v46, %v443_v55 }
 0xca7   :  { %883 = vtanh.f32 %v445_v56 }
 0xcb1   :  { %v884_v57 = vpop.eup %883 }
 0xcb2   :  { %449 = vrot.lane.b32.xlu0 %v884_v57, %s931_s23  ;;  %v755_v57 = vld [vmem:[%s1168_s0 + $0xe] sm:$0x3]  ;;  %s932_s0 = smov [#allocation3]  }
 0xcb3   :  { %s717_s12 = sshll.u32 %s932_s0, 4  ;;  %s718_s12 = int_to_ptr.vmem [resolvable:$true] %s717_s12 }
 0xcb4   :  { %s903_s15 = scalar_lea.vmem %s718_s12, 256  ;;  %p908_p1 = scmp.lt.s32.totalorder %s718_s12, %s718_s12 }
 0xcb5   :  { %p904_p0 = scmp.ne.s32.totalorder %s718_s12, %s903_s15  ;;  %p909_p2 = scmp.lt.s32.totalorder %s903_s15, %s903_s15 }
 0xcb7   :  { %p910_p3 = por %p909_p2, %p908_p1 }
 0xcb9   :  { %p911_p4 = pnand %p910_p3, %p904_p0 }
 0xd24   :  { %v450_v59 = vpop.permute.xlu0 %449 }
 0xd25   :  { %v452_v61 = vmul.f32 %v450_v59, %v447_v58 }
 0xd27   :  { %v1085_v62 = vadd.f32 %v453_v60, %v452_v61 }
 0xd29   :  { %v463_v63 = vpack.c.bf16 %v1085_v62, %v1085_v62 }
 0xd2b   :  { %465 = vrot.lane.b32.xlu1 %v463_v63, %s931_s23 }
 0xd9d   :  { %v466_v3 = vpop.permute.xlu1 %465 }
 0xd9e   :  { %827 = vmatmul.mubr.msk.bf16.vlgmr.msra.gmra.mrb[8].mxu1 %vm44_vm2, %v466_v3 }
 0xd9f   :  { %839 = vmatpush3.bf16.msra.mxu1 %v962_v0  ;;  %842 = vmatprep.mubr.msk.bf16.mxu1 %vm928_vm0, %v927_v1 }
 0xda0   :  { %840 = vmatprep.subr.bf16.mxu1 %v927_v1 }
 0xda3   :  { %841 = vmatpush3.bf16.msra.mxu1 %v970_v2 }
 0xe71   :  { %v504_v4 = vpop.f32.mrb[8].mxu1 }
 0xe72   :  { %v517_v5 = vadd.f32 %v504_v4, %v996_v6  ;;  %v828_v7 = vpop.f32.mrb[9].mxu1  ;;  %v510_v0 = vadd.f32 %v749_v10, %v504_v4 }
 0xe73   :  { %v507_v8 = vpop.f32.mrb[10].mxu1 }
 0xe74   :  { %519 = vrot.lane.b32.xlu0 %v517_v5, %s929_s21  ;;  %v829_v9 = vpop.f32.mrb[11].mxu1  ;;  %v751_v11 = vmul.f32 -1.442695, %v510_v0 }
 0xe76   :  { %885 = vpow2.f32 %v751_v11 }
 0xe80   :  { %v886_v12 = vpop.eup %885 }
 0xe81   :  { %v514_v13 = vadd.f32 1.0, %v886_v12 }
 0xe83   :  { %887 = vrcp.f32 %v514_v13 }
 0xe8d   :  { %v888_v1 = vpop.eup %887 }
 0xe8e   :  { %v529_v19 = vsub.f32 1.0, %v888_v1  ;;  %v535_v21 = vmul.f32 %v888_v1, %v1085_v62 }
 0xee6   :  { %v520_v2 = vpop.permute.xlu0 %519 }
 0xee7   :  { %v522_v15 = vmul.f32 %v888_v1, %v520_v2 }
 0xee9   :  { %524 = vrot.lane.b32.xlu1 %v522_v15, %s929_s21 }
 0xf5b   :  { %v525_v16 = vpop.permute.xlu1 %524 }
 0xf5c   :  { %v527_v17 = vadd.f32 %v749_v10, %v525_v16 }
 0xf5e   :  { %889 = vtanh.f32 %v527_v17 }
 0xf68   :  { %v890_v18 = vpop.eup %889 }
 0xf69   :  { %531 = vrot.lane.b32.xlu0 %v890_v18, %s931_s23 }
 0xfdb   :  { %v532_v20 = vpop.permute.xlu0 %531 }
 0xfdc   :  { %v534_v22 = vmul.f32 %v532_v20, %v529_v19 }
 0xfde   :  { %v1104_v23 = vadd.f32 %v535_v21, %v534_v22 }
 0xfe0   :  { %v545_v24 = vpack.c.bf16 %v1104_v23, %v1104_v23 }
 0xfe2   :  { %547 = vrot.lane.b32.xlu1 %v545_v24, %s931_s23 }
0x1054   :  { %v548_v25 = vpop.permute.xlu1 %547 }
0x1055   :  { %835 = vmatmul.mubr.msk.bf16.vlgmr.msra.gmra.mrb[12].mxu0 %vm44_vm2, %v548_v25 }
0x1128   :  { %v586_v26 = vpop.f32.mrb[12].mxu0 }
0x1129   :  { %v599_v27 = vadd.f32 %v586_v26, %v996_v6  ;;  %v836_v29 = vpop.f32.mrb[13].mxu0  ;;  %v592_v33 = vadd.f32 %v752_v32, %v586_v26 }
0x112a   :  { %v589_v30 = vpop.f32.mrb[14].mxu0 }
0x112b   :  { %601 = vrot.lane.b32.xlu0 %v599_v27, %s929_s21  ;;  %v837_v31 = vpop.f32.mrb[15].mxu0  ;;  %v754_v34 = vmul.f32 -1.442695, %v592_v33 }
0x112d   :  { %891 = vpow2.f32 %v754_v34 }
0x1137   :  { %v892_v35 = vpop.eup %891 }
0x1138   :  { %v596_v36 = vadd.f32 1.0, %v892_v35 }
0x113a   :  { %893 = vrcp.f32 %v596_v36 }
0x1144   :  { %v894_v37 = vpop.eup %893 }
0x1145   :  { %v611_v44 = vsub.f32 1.0, %v894_v37  ;;  %v617_v46 = vmul.f32 %v894_v37, %v1104_v23 }
0x119d   :  { %v602_v39 = vpop.permute.xlu0 %601 }
0x119e   :  { %v604_v40 = vmul.f32 %v894_v37, %v602_v39 }
0x11a0   :  { %606 = vrot.lane.b32.xlu1 %v604_v40, %s929_s21 }
0x1212   :  { %v607_v41 = vpop.permute.xlu1 %606 }
0x1213   :  { %v609_v42 = vadd.f32 %v752_v32, %v607_v41 }
0x1215   :  { %895 = vtanh.f32 %v609_v42 }
0x121f   :  { %v896_v43 = vpop.eup %895 }
0x1220   :  { %613 = vrot.lane.b32.xlu0 %v896_v43, %s931_s23 }
0x1292   :  { %v614_v45 = vpop.permute.xlu0 %613 }
0x1293   :  { %v616_v47 = vmul.f32 %v614_v45, %v611_v44 }
0x1295   :  { %v618_v48 = vadd.f32 %v617_v46, %v616_v47 }
0x1297   :  { %v627_v49 = vpack.c.bf16 %v618_v48, %v618_v48 }
0x1299   :  { %629 = vrot.lane.b32.xlu1 %v627_v49, %s931_s23 }
0x130b   :  { %v630_v50 = vpop.permute.xlu1 %629 }
0x130c   :  { %843 = vmatmul.mubr.msk.bf16.vlgmr.msra.gmra.mrb[12].mxu1 %vm44_vm2, %v630_v50 }
0x13df   :  { %v668_v52 = vpop.f32.mrb[12].mxu1 }
0x13e0   :  { %v681_v53 = vadd.f32 %v668_v52, %v996_v6  ;;  %v844_v54 = vpop.f32.mrb[13].mxu1  ;;  %v674_v58 = vadd.f32 %v755_v57, %v668_v52 }
0x13e1   :  { %v671_v55 = vpop.f32.mrb[14].mxu1 }
0x13e2   :  { %683 = vrot.lane.b32.xlu0 %v681_v53, %s929_s21  ;;  %v845_v56 = vpop.f32.mrb[15].mxu1  ;;  %v757_v59 = vmul.f32 -1.442695, %v674_v58 }
0x13e4   :  { %897 = vpow2.f32 %v757_v59 }
0x13ee   :  { %v898_v60 = vpop.eup %897 }
0x13ef   :  { %v678_v61 = vadd.f32 1.0, %v898_v60 }
0x13f1   :  { %899 = vrcp.f32 %v678_v61 }
0x13fb   :  { %v900_v63 = vpop.eup %899 }
0x13fc   :  { %v699_v0 = vmul.f32 %v900_v63, %v618_v48 }
0x1454   :  { %v684_v3 = vpop.permute.xlu0 %683 }
0x1455   :  { %v686_v4 = vmul.f32 %v900_v63, %v684_v3 }
0x1457   :  { %688 = vrot.lane.b32.xlu1 %v686_v4, %s929_s21 }
0x145b   :  { %128 = vrot.lane.b32.xlu1 %v1006_v28, %s931_s23 }
0x145f   :  { %292 = vrot.lane.b32.xlu1 %v1046_v14, %s931_s23  ;;  %v693_v14 = vsub.f32 1.0, %v900_v63 }
0x1463   :  { %456 = vrot.lane.b32.xlu1 %v1085_v62, %s931_s23 }
0x1467   :  { %620 = vrot.lane.b32.xlu1 %v618_v48, %s931_s23 }
0x14c9   :  { %v689_v6 = vpop.permute.xlu1 %688 }
0x14ca   :  { %v691_v5 = vadd.f32 %v755_v57, %v689_v6 }
0x14cc   :  { %901 = vtanh.f32 %v691_v5 }
0x14cd   :  { %v129_v7 = vpop.permute.xlu1 %128 }
0x14ce   :  { %132 = vst.msk [vmem:[#allocation3] sm:$0x3] %vm22_vm1, %v129_v7 }
0x14d1   :  { %v293_v8 = vpop.permute.xlu1 %292 }
0x14d2   :  { %296 = vst.msk [vmem:[#allocation3 + $0x4] sm:$0x3] %vm22_vm1, %v293_v8 }
0x14d5   :  { %v457_v9 = vpop.permute.xlu1 %456 }
0x14d6   :  { %v902_v10 = vpop.eup %901  ;;  %460 = vst.msk [vmem:[#allocation3 + $0x8] sm:$0x3] %vm22_vm1, %v457_v9 }
0x14d7   :  { %695 = vrot.lane.b32.xlu0 %v902_v10, %s931_s23 }
0x14d9   :  { %v621_v28 = vpop.permute.xlu1 %620 }
0x14da   :  { %624 = vst.msk [vmem:[#allocation3 + $0xc] sm:$0x3] %vm22_vm1, %v621_v28 }
0x14db   :  { %210 = vrot.lane.b32.xlu0 %v1026_v51, %s931_s23 }
0x14df   :  { %374 = vrot.lane.b32.xlu0 %v1066_v38, %s931_s23 }
0x14e3   :  { %538 = vrot.lane.b32.xlu0 %v1104_v23, %s931_s23 }
0x1549   :  { %v696_v62 = vpop.permute.xlu0 %695 }
0x154a   :  { %v698_v11 = vmul.f32 %v696_v62, %v693_v14 }
0x154c   :  { %v700_v12 = vadd.f32 %v699_v0, %v698_v11 }
0x154d   :  { %v211_v13 = vpop.permute.xlu0 %210 }
0x154e   :  { %214 = vst.msk [vmem:[#allocation3 + $0x2] sm:$0x3] %vm22_vm1, %v211_v13  ;;  %702 = vrot.lane.b32.xlu0 %v700_v12, %s931_s23 }
0x1551   :  { %v375_v1 = vpop.permute.xlu0 %374 }
0x1552   :  { %378 = vst.msk [vmem:[#allocation3 + $0x6] sm:$0x3] %vm22_vm1, %v375_v1 }
0x1555   :  { %v539_v51 = vpop.permute.xlu0 %538 }
0x1556   :  { %542 = vst.msk [vmem:[#allocation3 + $0xa] sm:$0x3] %vm22_vm1, %v539_v51 }
0x15c0   :  { %v703_v38 = vpop.permute.xlu0 %702 }
0x15c1   :  { %706 = vst.msk [vmem:[#allocation3 + $0xe] sm:$0x3] %vm22_vm1, %v703_v38  ;;  %707 = vst.msk [vmem:[#allocation2] sm:$0x3] %vm22_vm1, %v703_v38 }
0x15c2   :  { %711 = vst.msk [vmem:[%s1172_s4] sm:$0x3] %vm22_vm1, %v703_v38 }
0x15c3   :  { %914 = shalt.err (!%p911_p4)
}
0x15c4   :  { %s915_s18 = scalar_lea.hbm %s1171_s3, 256 }
0x15c5   :  { %p916_p5 = scmp.ne.s32.totalorder %s1171_s3, %s915_s18  ;;  %p919_p6 = scmp.lt.u32.totalorder %s915_s18, %s1171_s3 }
0x15c7   :  { %p921_p7 = pnand %p919_p6, %p916_p5 }
0x15c9   :  { %924 = shalt.err (!%p921_p7)
}
0x15ca   :  { %s933_s4 = smov 2  }
0x15cb   :  { %723 = dma.vmem_to_hbm [thread:$0]  %s718_s12, 256, %s1171_s3, [#allocation4], %s930_s1, %s930_s1, %s933_s4  }
0x15cc   :  { %925 = dma.done.wait [#allocation4], 256  }
0x15cd   :  { %926 = vsyncadd [#allocation4], 4294967040 }
0x15ce   :  { %731 = vsyncpa [#allocation4], 1 }

// kernel: encoder_forward.2
= control target key start
LH: loop header
LB: loop body
LE: loop exit
PB: predicated region body
PF: predicated region fallthrough
CT: control target
= control target key end

     0   :  { %vm21_vm0 = vcmask 254976   ;;  %v895_v0 = vmov 0.0   ;;  %vm896_vm1 = vmmov 0   ;;  %s897_s21 = smov 64   ;;  %vm43_vm2 = vcmask 261120   ;;  %s899_s23 = smov 96   ;;  %s1143_s1 = inlined_call_operand.vmem [shape: bf16[32,96], index: 1, kind: input, shape index: {}]   ;;  %s1144_s2 = inlined_call_operand.vmem [shape: f32[1,32], index: 2, kind: input, shape index: {}]   ;;  %s1145_s0 = inlined_call_operand.vmem [shape: f32[8,2,96], index: 0, kind: input, shape index: {}]   ;;  %s1146_s3 = inlined_call_operand.vmem [shape: f32[8,2,32], index: 3, kind: output, shape index: {0}]   ;;  %s1147_s4 = inlined_call_operand.vmem [shape: f32[2,32], index: 4, kind: output, shape index: {1}]  }
   0x1   :  { %776 = vmatprep.subr.bf16.mxu0 %v895_v0  ;;  %v929_v1 = vld [vmem:[%s1143_s1] sm:$0xff]   ;;  %780 = vmatprep.mubr.msk.bf16.mxu0 %vm896_vm1, %v895_v0  ;;  %22 = vst.msk [vmem:[#allocation2] sm:$0x3] %vm21_vm0, %v895_v0  ;;  %v942_v2 = vld [vmem:[%s1143_s1 + $0x8] sm:$0xff]   ;;  %s898_s1 = smov 32  }
   0x2   :  { %784 = vmatprep.subr.bf16.mxu1 %v895_v0  ;;  %788 = vmatprep.mubr.msk.bf16.mxu1 %vm896_vm1, %v895_v0  ;;  %v723_v3 = vld [vmem:[%s1144_s2] ss:$0 sm:$0xff]  ;;  %v724_v36 = vld [vmem:[%s1145_s0 + $0x2] sm:$0x3]  ;;  %v728_v59 = vld [vmem:[%s1145_s0 + $0x4] sm:$0x3] }
   0x3   :  { %777 = vmatpush3.bf16.msra.mxu0 %v929_v1  ;;  %785 = vmatpush3.bf16.msra.mxu1 %v929_v1  ;;  %v29_v12 = vld [vmem:[%s1145_s0] sm:$0x3] }
   0x4   :  { %778 = vmatprep.subr.bf16.mxu0 %v895_v0  ;;  %99 = vrot.lane.b32.xlu0 %v723_v3, %s897_s21 }
   0x5   :  { %786 = vmatprep.subr.bf16.mxu1 %v895_v0 }
   0x7   :  { %779 = vmatpush3.bf16.msra.mxu0 %v942_v2  ;;  %787 = vmatpush3.bf16.msra.mxu1 %v942_v2 }
   0x8   :  { %v28_v4 = vld [vmem:[#allocation2] sm:$0x3]  ;;  %792 = vmatprep.subr.bf16.mxu0 %v895_v0  ;;  %800 = vmatprep.subr.bf16.mxu1 %v895_v0 }
   0x9   :  { %v30_v5 = vpack.c.bf16 %v28_v4, %v28_v4 }
   0xb   :  { %781 = vmatmul.mubr.msk.bf16.vlgmr.msra.gmra.mrb[0].mxu0 %vm43_vm2, %v30_v5 }
   0xc   :  { %793 = vmatpush3.bf16.msra.mxu0 %v929_v1  ;;  %796 = vmatprep.mubr.msk.bf16.mxu0 %vm896_vm1, %v895_v0 }
   0xd   :  { %794 = vmatprep.subr.bf16.mxu0 %v895_v0 }
  0x10   :  { %795 = vmatpush3.bf16.msra.mxu0 %v942_v2 }
  0x11   :  { %808 = vmatprep.subr.bf16.mxu0 %v895_v0 }
  0x76   :  { %v962_v6 = vpop.permute.xlu0 %99 }
  0xde   :  { %v81_v7 = vpop.f32.mrb[0].mxu0 }
  0xdf   :  { %v102_v8 = vadd.f32 %v962_v6, %v81_v7  ;;  %v782_v9 = vpop.f32.mrb[1].mxu0  ;;  %v87_v13 = vadd.f32 %v81_v7, %v29_v12 }
  0xe0   :  { %v84_v10 = vpop.f32.mrb[2].mxu0 }
  0xe1   :  { %104 = vrot.lane.b32.xlu0 %v102_v8, %s897_s21  ;;  %v783_v11 = vpop.f32.mrb[3].mxu0  ;;  %v722_v14 = vmul.f32 -1.442695, %v87_v13 }
  0xe3   :  { %847 = vpow2.f32 %v722_v14 }
  0xe5   :  { %121 = vrot.lane.b32.xlu0 %v28_v4, %s898_s1 }
  0xed   :  { %v848_v15 = vpop.eup %847 }
  0xee   :  { %v91_v16 = vadd.f32 1.0, %v848_v15 }
  0xf0   :  { %849 = vrcp.f32 %v91_v16 }
  0xfa   :  { %v850_v17 = vpop.eup %849 }
  0xfb   :  { %v114_v24 = vsub.f32 1.0, %v850_v17 }
 0x153   :  { %v105_v18 = vpop.permute.xlu0 %104 }
 0x154   :  { %v107_v19 = vmul.f32 %v850_v17, %v105_v18 }
 0x156   :  { %109 = vrot.lane.b32.xlu1 %v107_v19, %s897_s21 }
 0x157   :  { %v122_v23 = vpop.permute.xlu0 %121 }
 0x158   :  { %v124_v26 = vmul.f32 %v850_v17, %v122_v23 }
 0x1c8   :  { %v110_v20 = vpop.permute.xlu1 %109 }
 0x1c9   :  { %v112_v21 = vadd.f32 %v110_v20, %v29_v12 }
 0x1cb   :  { %851 = vtanh.f32 %v112_v21 }
 0x1d5   :  { %v852_v22 = vpop.eup %851 }
 0x1d6   :  { %116 = vrot.lane.b32.xlu1 %v852_v22, %s899_s23  ;;  %v732_v22 = vld [vmem:[%s1145_s0 + $0x6] sm:$0x3] }
 0x248   :  { %v117_v25 = vpop.permute.xlu1 %116 }
 0x249   :  { %v119_v27 = vmul.f32 %v117_v25, %v114_v24 }
 0x24b   :  { %v971_v28 = vadd.f32 %v124_v26, %v119_v27 }
 0x24d   :  { %v134_v29 = vpack.c.bf16 %v971_v28, %v971_v28 }
 0x24f   :  { %136 = vrot.lane.b32.xlu1 %v134_v29, %s899_s23 }
 0x2c1   :  { %v137_v30 = vpop.permute.xlu1 %136 }
 0x2c2   :  { %789 = vmatmul.mubr.msk.bf16.vlgmr.msra.gmra.mrb[0].mxu1 %vm43_vm2, %v137_v30 }
 0x2c3   :  { %801 = vmatpush3.bf16.msra.mxu1 %v929_v1  ;;  %804 = vmatprep.mubr.msk.bf16.mxu1 %vm896_vm1, %v895_v0 }
 0x2c4   :  { %802 = vmatprep.subr.bf16.mxu1 %v895_v0 }
 0x2c7   :  { %803 = vmatpush3.bf16.msra.mxu1 %v942_v2 }
 0x2c8   :  { %816 = vmatprep.subr.bf16.mxu1 %v895_v0 }
 0x395   :  { %v175_v31 = vpop.f32.mrb[0].mxu1 }
 0x396   :  { %v188_v32 = vadd.f32 %v175_v31, %v962_v6  ;;  %v790_v33 = vpop.f32.mrb[1].mxu1  ;;  %v181_v37 = vadd.f32 %v724_v36, %v175_v31 }
 0x397   :  { %v178_v34 = vpop.f32.mrb[2].mxu1 }
 0x398   :  { %190 = vrot.lane.b32.xlu0 %v188_v32, %s897_s21  ;;  %v791_v35 = vpop.f32.mrb[3].mxu1  ;;  %v726_v38 = vmul.f32 -1.442695, %v181_v37 }
 0x39a   :  { %853 = vpow2.f32 %v726_v38 }
 0x3a4   :  { %v854_v39 = vpop.eup %853 }
 0x3a5   :  { %v185_v40 = vadd.f32 1.0, %v854_v39 }
 0x3a7   :  { %855 = vrcp.f32 %v185_v40 }
 0x3b1   :  { %v856_v41 = vpop.eup %855 }
 0x3b2   :  { %v200_v47 = vsub.f32 1.0, %v856_v41  ;;  %v206_v49 = vmul.f32 %v856_v41, %v971_v28 }
 0x40a   :  { %v191_v42 = vpop.permute.xlu0 %190 }
 0x40b   :  { %v193_v43 = vmul.f32 %v856_v41, %v191_v42 }
 0x40d   :  { %195 = vrot.lane.b32.xlu1 %v193_v43, %s897_s21 }
 0x47f   :  { %v196_v44 = vpop.permute.xlu1 %195 }
 0x480   :  { %v198_v45 = vadd.f32 %v724_v36, %v196_v44 }
 0x482   :  { %857 = vtanh.f32 %v198_v45 }
 0x48c   :  { %v858_v46 = vpop.eup %857 }
 0x48d   :  { %202 = vrot.lane.b32.xlu0 %v858_v46, %s899_s23  ;;  %v736_v46 = vld [vmem:[%s1145_s0 + $0x8] sm:$0x3] }
 0x4ff   :  { %v203_v48 = vpop.permute.xlu0 %202 }
 0x500   :  { %v205_v50 = vmul.f32 %v203_v48, %v200_v47 }
 0x502   :  { %v991_v51 = vadd.f32 %v206_v49, %v205_v50 }
 0x504   :  { %v216_v52 = vpack.c.bf16 %v991_v51, %v991_v51 }
 0x506   :  { %218 = vrot.lane.b32.xlu1 %v216_v52, %s899_s23 }
 0x578   :  { %v219_v53 = vpop.permute.xlu1 %218 }
 0x579   :  { %797 = vmatmul.mubr.msk.bf16.vlgmr.msra.gmra.mrb[4].mxu0 %vm43_vm2, %v219_v53 }
 0x57a   :  { %809 = vmatpush3.bf16.msra.mxu0 %v929_v1  ;;  %812 = vmatprep.mubr.msk.bf16.mxu0 %vm896_vm1, %v895_v0 }
 0x57b   :  { %810 = vmatprep.subr.bf16.mxu0 %v895_v0 }
 0x57e   :  { %811 = vmatpush3.bf16.msra.mxu0 %v942_v2 }
 0x57f   :  { %824 = vmatprep.subr.bf16.mxu0 %v895_v0 }
 0x64c   :  { %v257_v54 = vpop.f32.mrb[4].mxu0 }
 0x64d   :  { %v270_v55 = vadd.f32 %v257_v54, %v962_v6  ;;  %v798_v56 = vpop.f32.mrb[5].mxu0  ;;  %v263_v60 = vadd.f32 %v728_v59, %v257_v54 }
 0x64e   :  { %v260_v57 = vpop.f32.mrb[6].mxu0 }
 0x64f   :  { %272 = vrot.lane.b32.xlu0 %v270_v55, %s897_s21  ;;  %v799_v58 = vpop.f32.mrb[7].mxu0  ;;  %v730_v61 = vmul.f32 -1.442695, %v263_v60 }
 0x651   :  { %859 = vpow2.f32 %v730_v61 }
 0x65b   :  { %v860_v62 = vpop.eup %859 }
 0x65c   :  { %v267_v63 = vadd.f32 1.0, %v860_v62 }
 0x65e   :  { %861 = vrcp.f32 %v267_v63 }
 0x668   :  { %v862_v3 = vpop.eup %861 }
 0x669   :  { %v282_v10 = vsub.f32 1.0, %v862_v3  ;;  %v288_v12 = vmul.f32 %v862_v3, %v991_v51 }
 0x6c1   :  { %v273_v4 = vpop.permute.xlu0 %272 }
 0x6c2   :  { %v275_v5 = vmul.f32 %v862_v3, %v273_v4 }
 0x6c4   :  { %277 = vrot.lane.b32.xlu1 %v275_v5, %s897_s21 }
 0x736   :  { %v278_v7 = vpop.permute.xlu1 %277 }
 0x737   :  { %v280_v8 = vadd.f32 %v728_v59, %v278_v7 }
 0x739   :  { %863 = vtanh.f32 %v280_v8 }
 0x743   :  { %v864_v9 = vpop.eup %863 }
 0x744   :  { %284 = vrot.lane.b32.xlu0 %v864_v9, %s899_s23 }
 0x7b6   :  { %v285_v11 = vpop.permute.xlu0 %284 }
 0x7b7   :  { %v287_v13 = vmul.f32 %v285_v11, %v282_v10  ;;  %v740_v10 = vld [vmem:[%s1145_s0 + $0xa] sm:$0x3] }
 0x7b9   :  { %v1011_v14 = vadd.f32 %v288_v12, %v287_v13 }
 0x7bb   :  { %v298_v15 = vpack.c.bf16 %v1011_v14, %v1011_v14 }
 0x7bd   :  { %300 = vrot.lane.b32.xlu1 %v298_v15, %s899_s23 }
 0x82f   :  { %v301_v16 = vpop.permute.xlu1 %300 }
 0x830   :  { %805 = vmatmul.mubr.msk.bf16.vlgmr.msra.gmra.mrb[4].mxu1 %vm43_vm2, %v301_v16 }
 0x831   :  { %817 = vmatpush3.bf16.msra.mxu1 %v929_v1  ;;  %820 = vmatprep.mubr.msk.bf16.mxu1 %vm896_vm1, %v895_v0 }
 0x832   :  { %818 = vmatprep.subr.bf16.mxu1 %v895_v0 }
 0x835   :  { %819 = vmatpush3.bf16.msra.mxu1 %v942_v2 }
 0x836   :  { %832 = vmatprep.subr.bf16.mxu1 %v895_v0 }
 0x903   :  { %v339_v17 = vpop.f32.mrb[4].mxu1 }
 0x904   :  { %v352_v18 = vadd.f32 %v339_v17, %v962_v6  ;;  %v806_v19 = vpop.f32.mrb[5].mxu1  ;;  %v345_v23 = vadd.f32 %v732_v22, %v339_v17 }
 0x905   :  { %v342_v20 = vpop.f32.mrb[6].mxu1 }
 0x906   :  { %354 = vrot.lane.b32.xlu0 %v352_v18, %s897_s21  ;;  %v807_v21 = vpop.f32.mrb[7].mxu1  ;;  %v734_v24 = vmul.f32 -1.442695, %v345_v23 }
 0x908   :  { %865 = vpow2.f32 %v734_v24 }
 0x912   :  { %v866_v25 = vpop.eup %865 }
 0x913   :  { %v349_v26 = vadd.f32 1.0, %v866_v25 }
 0x915   :  { %867 = vrcp.f32 %v349_v26 }
 0x91f   :  { %v868_v27 = vpop.eup %867 }
 0x920   :  { %v364_v34 = vsub.f32 1.0, %v868_v27  ;;  %v370_v36 = vmul.f32 %v868_v27, %v1011_v14 }
 0x978   :  { %v355_v29 = vpop.permute.xlu0 %354 }
 0x979   :  { %v357_v30 = vmul.f32 %v868_v27, %v355_v29 }
 0x97b   :  { %359 = vrot.lane.b32.xlu1 %v357_v30, %s897_s21 }
 0x9ed   :  { %v360_v31 = vpop.permute.xlu1 %359 }
 0x9ee   :  { %v362_v32 = vadd.f32 %v732_v22, %v360_v31 }
 0x9f0   :  { %869 = vtanh.f32 %v362_v32  ;;  %v744_v32 = vld [vmem:[%s1145_s0 + $0xc] sm:$0x3] }
 0x9fa   :  { %v870_v33 = vpop.eup %869 }
 0x9fb   :  { %366 = vrot.lane.b32.xlu0 %v870_v33, %s899_s23 }
 0xa6d   :  { %v367_v35 = vpop.permute.xlu0 %366 }
 0xa6e   :  { %v369_v37 = vmul.f32 %v367_v35, %v364_v34 }
 0xa70   :  { %v1031_v38 = vadd.f32 %v370_v36, %v369_v37 }
 0xa72   :  { %v380_v39 = vpack.c.bf16 %v1031_v38, %v1031_v38 }
 0xa74   :  { %382 = vrot.lane.b32.xlu1 %v380_v39, %s899_s23 }
 0xae6   :  { %v383_v40 = vpop.permute.xlu1 %382 }
 0xae7   :  { %813 = vmatmul.mubr.msk.bf16.vlgmr.msra.gmra.mrb[8].mxu0 %vm43_vm2, %v383_v40 }
 0xae8   :  { %825 = vmatpush3.bf16.msra.mxu0 %v929_v1  ;;  %828 = vmatprep.mubr.msk.bf16.mxu0 %vm896_vm1, %v895_v0 }
 0xae9   :  { %826 = vmatprep.subr.bf16.mxu0 %v895_v0 }
 0xaec   :  { %827 = vmatpush3.bf16.msra.mxu0 %v942_v2 }
 0xbba   :  { %v421_v41 = vpop.f32.mrb[8].mxu0 }
 0xbbb   :  { %v434_v42 = vadd.f32 %v421_v41, %v962_v6  ;;  %v814_v43 = vpop.f32.mrb[9].mxu0  ;;  %v427_v47 = vadd.f32 %v736_v46, %v421_v41 }
 0xbbc   :  { %v424_v44 = vpop.f32.mrb[10].mxu0 }
 0xbbd   :  { %436 = vrot.lane.b32.xlu0 %v434_v42, %s897_s21  ;;  %v815_v45 = vpop.f32.mrb[11].mxu0  ;;  %v738_v48 = vmul.f32 -1.442695, %v427_v47 }
 0xbbf   :  { %871 = vpow2.f32 %v738_v48 }
 0xbc9   :  { %v872_v49 = vpop.eup %871 }
 0xbca   :  { %v431_v50 = vadd.f32 1.0, %v872_v49 }
 0xbcc   :  { %873 = vrcp.f32 %v431_v50 }
 0xbd6   :  { %v874_v52 = vpop.eup %873 }
 0xbd7   :  { %v446_v58 = vsub.f32 1.0, %v874_v52  ;;  %v452_v60 = vmul.f32 %v874_v52, %v1031_v38 }
 0xc2f   :  { %v437_v53 = vpop.permute.xlu0 %436 }
 0xc30   :  { %v439_v54 = vmul.f32 %v874_v52, %v437_v53 }
 0xc32   :  { %441 = vrot.lane.b32.xlu1 %v439_v54, %s897_s21 }
 0xca4   :  { %v442_v55 = vpop.permute.xlu1 %441 }
 0xca5   :  { %v444_v56 = vadd.f32 %v736_v46, %v442_v55 }
 0xca7   :  { %875 = vtanh.f32 %v444_v56 }
 0xcb1   :  { %v876_v57 = vpop.eup %875 }
 0xcb2   :  { %448 = vrot.lane.b32.xlu0 %v876_v57, %s899_s23  ;;  %v748_v57 = vld [vmem:[%s1145_s0 + $0xe] sm:$0x3] }
 0xd24   :  { %v449_v59 = vpop.permute.xlu0 %448 }
 0xd25   :  { %v451_v61 = vmul.f32 %v449_v59, %v446_v58 }
 0xd27   :  { %v1050_v62 = vadd.f32 %v452_v60, %v451_v61 }
 0xd29   :  { %v462_v63 = vpack.c.bf16 %v1050_v62, %v1050_v62 }
 0xd2b   :  { %464 = vrot.lane.b32.xlu1 %v462_v63, %s899_s23 }
 0xd9d   :  { %v465_v3 = vpop.permute.xlu1 %464 }
 0xd9e   :  { %821 = vmatmul.mubr.msk.bf16.vlgmr.msra.gmra.mrb[8].mxu1 %vm43_vm2, %v465_v3 }
 0xd9f   :  { %833 = vmatpush3.bf16.msra.mxu1 %v929_v1  ;;  %836 = vmatprep.mubr.msk.bf16.mxu1 %vm896_vm1, %v895_v0 }
 0xda0   :  { %834 = vmatprep.subr.bf16.mxu1 %v895_v0 }
 0xda3   :  { %835 = vmatpush3.bf16.msra.mxu1 %v942_v2 }
 0xe71   :  { %v503_v4 = vpop.f32.mrb[8].mxu1 }
 0xe72   :  { %v516_v5 = vadd.f32 %v503_v4, %v962_v6  ;;  %v822_v7 = vpop.f32.mrb[9].mxu1  ;;  %v509_v1 = vadd.f32 %v740_v10, %v503_v4 }
 0xe73   :  { %v506_v8 = vpop.f32.mrb[10].mxu1 }
 0xe74   :  { %518 = vrot.lane.b32.xlu0 %v516_v5, %s897_s21  ;;  %v823_v9 = vpop.f32.mrb[11].mxu1  ;;  %v742_v11 = vmul.f32 -1.442695, %v509_v1 }
 0xe76   :  { %877 = vpow2.f32 %v742_v11 }
 0xe80   :  { %v878_v12 = vpop.eup %877 }
 0xe81   :  { %v513_v13 = vadd.f32 1.0, %v878_v12 }
 0xe83   :  { %879 = vrcp.f32 %v513_v13 }
 0xe8d   :  { %v880_v0 = vpop.eup %879 }
 0xe8e   :  { %v528_v19 = vsub.f32 1.0, %v880_v0  ;;  %v534_v21 = vmul.f32 %v880_v0, %v1050_v62 }
 0xee6   :  { %v519_v2 = vpop.permute.xlu0 %518 }
 0xee7   :  { %v521_v15 = vmul.f32 %v880_v0, %v519_v2 }
 0xee9   :  { %523 = vrot.lane.b32.xlu1 %v521_v15, %s897_s21 }
 0xf5b   :  { %v524_v16 = vpop.permute.xlu1 %523 }
 0xf5c   :  { %v526_v17 = vadd.f32 %v740_v10, %v524_v16 }
 0xf5e   :  { %881 = vtanh.f32 %v526_v17 }
 0xf68   :  { %v882_v18 = vpop.eup %881 }
 0xf69   :  { %530 = vrot.lane.b32.xlu0 %v882_v18, %s899_s23 }
 0xfdb   :  { %v531_v20 = vpop.permute.xlu0 %530 }
 0xfdc   :  { %v533_v22 = vmul.f32 %v531_v20, %v528_v19 }
 0xfde   :  { %v1069_v23 = vadd.f32 %v534_v21, %v533_v22 }
 0xfe0   :  { %v544_v24 = vpack.c.bf16 %v1069_v23, %v1069_v23 }
 0xfe2   :  { %546 = vrot.lane.b32.xlu1 %v544_v24, %s899_s23 }
0x1054   :  { %v547_v25 = vpop.permute.xlu1 %546 }
0x1055   :  { %829 = vmatmul.mubr.msk.bf16.vlgmr.msra.gmra.mrb[12].mxu0 %vm43_vm2, %v547_v25 }
0x1128   :  { %v585_v26 = vpop.f32.mrb[12].mxu0 }
0x1129   :  { %v598_v27 = vadd.f32 %v585_v26, %v962_v6  ;;  %v830_v29 = vpop.f32.mrb[13].mxu0  ;;  %v591_v33 = vadd.f32 %v744_v32, %v585_v26 }
0x112a   :  { %v588_v30 = vpop.f32.mrb[14].mxu0 }
0x112b   :  { %600 = vrot.lane.b32.xlu0 %v598_v27, %s897_s21  ;;  %v831_v31 = vpop.f32.mrb[15].mxu0  ;;  %v746_v34 = vmul.f32 -1.442695, %v591_v33 }
0x112d   :  { %883 = vpow2.f32 %v746_v34 }
0x1137   :  { %v884_v35 = vpop.eup %883 }
0x1138   :  { %v595_v36 = vadd.f32 1.0, %v884_v35 }
0x113a   :  { %885 = vrcp.f32 %v595_v36 }
0x1144   :  { %v886_v37 = vpop.eup %885 }
0x1145   :  { %v610_v44 = vsub.f32 1.0, %v886_v37  ;;  %v616_v46 = vmul.f32 %v886_v37, %v1069_v23 }
0x119d   :  { %v601_v39 = vpop.permute.xlu0 %600 }
0x119e   :  { %v603_v40 = vmul.f32 %v886_v37, %v601_v39 }
0x11a0   :  { %605 = vrot.lane.b32.xlu1 %v603_v40, %s897_s21 }
0x1212   :  { %v606_v41 = vpop.permute.xlu1 %605 }
0x1213   :  { %v608_v42 = vadd.f32 %v744_v32, %v606_v41 }
0x1215   :  { %887 = vtanh.f32 %v608_v42 }
0x121f   :  { %v888_v43 = vpop.eup %887 }
0x1220   :  { %612 = vrot.lane.b32.xlu0 %v888_v43, %s899_s23 }
0x1292   :  { %v613_v45 = vpop.permute.xlu0 %612 }
0x1293   :  { %v615_v47 = vmul.f32 %v613_v45, %v610_v44 }
0x1295   :  { %v617_v48 = vadd.f32 %v616_v46, %v615_v47 }
0x1297   :  { %v626_v49 = vpack.c.bf16 %v617_v48, %v617_v48 }
0x1299   :  { %628 = vrot.lane.b32.xlu1 %v626_v49, %s899_s23 }
0x130b   :  { %v629_v50 = vpop.permute.xlu1 %628 }
0x130c   :  { %837 = vmatmul.mubr.msk.bf16.vlgmr.msra.gmra.mrb[12].mxu1 %vm43_vm2, %v629_v50 }
0x13df   :  { %v667_v52 = vpop.f32.mrb[12].mxu1 }
0x13e0   :  { %v680_v53 = vadd.f32 %v667_v52, %v962_v6  ;;  %v838_v54 = vpop.f32.mrb[13].mxu1  ;;  %v673_v58 = vadd.f32 %v748_v57, %v667_v52 }
0x13e1   :  { %v670_v55 = vpop.f32.mrb[14].mxu1 }
0x13e2   :  { %682 = vrot.lane.b32.xlu0 %v680_v53, %s897_s21  ;;  %v839_v56 = vpop.f32.mrb[15].mxu1  ;;  %v750_v59 = vmul.f32 -1.442695, %v673_v58 }
0x13e4   :  { %889 = vpow2.f32 %v750_v59 }
0x13ee   :  { %v890_v60 = vpop.eup %889 }
0x13ef   :  { %v677_v61 = vadd.f32 1.0, %v890_v60 }
0x13f1   :  { %891 = vrcp.f32 %v677_v61 }
0x13fb   :  { %v892_v63 = vpop.eup %891 }
0x13fc   :  { %v692_v9 = vsub.f32 1.0, %v892_v63  ;;  %v698_v1 = vmul.f32 %v892_v63, %v617_v48 }
0x1454   :  { %v683_v3 = vpop.permute.xlu0 %682 }
0x1455   :  { %v685_v4 = vmul.f32 %v892_v63, %v683_v3 }
0x1457   :  { %687 = vrot.lane.b32.xlu1 %v685_v4, %s897_s21 }
0x145b   :  { %127 = vrot.lane.b32.xlu1 %v971_v28, %s899_s23 }
0x145f   :  { %291 = vrot.lane.b32.xlu1 %v1011_v14, %s899_s23 }
0x1463   :  { %455 = vrot.lane.b32.xlu1 %v1050_v62, %s899_s23 }
0x1467   :  { %619 = vrot.lane.b32.xlu1 %v617_v48, %s899_s23 }
0x14c9   :  { %v688_v6 = vpop.permute.xlu1 %687 }
0x14ca   :  { %v690_v5 = vadd.f32 %v748_v57, %v688_v6 }
0x14cc   :  { %893 = vtanh.f32 %v690_v5 }
0x14cd   :  { %v128_v7 = vpop.permute.xlu1 %127 }
0x14ce   :  { %131 = vst.msk [vmem:[%s1146_s3] sm:$0x3] %vm21_vm0, %v128_v7 }
0x14d1   :  { %v292_v8 = vpop.permute.xlu1 %291 }
0x14d2   :  { %731 = vst.msk [vmem:[%s1146_s3 + $0x4] sm:$0x3] %vm21_vm0, %v292_v8 }
0x14d5   :  { %v456_v28 = vpop.permute.xlu1 %455 }
0x14d6   :  { %v894_v14 = vpop.eup %893  ;;  %739 = vst.msk [vmem:[%s1146_s3 + $0x8] sm:$0x3] %vm21_vm0, %v456_v28 }
0x14d7   :  { %694 = vrot.lane.b32.xlu0 %v894_v14, %s899_s23 }
0x14d9   :  { %v620_v62 = vpop.permute.xlu1 %619 }
0x14da   :  { %747 = vst.msk [vmem:[%s1146_s3 + $0xc] sm:$0x3] %vm21_vm0, %v620_v62 }
0x14db   :  { %209 = vrot.lane.b32.xlu0 %v991_v51, %s899_s23 }
0x14df   :  { %373 = vrot.lane.b32.xlu0 %v1031_v38, %s899_s23 }
0x14e3   :  { %537 = vrot.lane.b32.xlu0 %v1069_v23, %s899_s23 }
0x1549   :  { %v695_v10 = vpop.permute.xlu0 %694 }
0x154a   :  { %v697_v11 = vmul.f32 %v695_v10, %v692_v9 }
0x154c   :  { %v699_v12 = vadd.f32 %v698_v1, %v697_v11 }
0x154d   :  { %v210_v13 = vpop.permute.xlu0 %209 }
0x154e   :  { %727 = vst.msk [vmem:[%s1146_s3 + $0x2] sm:$0x3] %vm21_vm0, %v210_v13  ;;  %701 = vrot.lane.b32.xlu0 %v699_v12, %s899_s23 }
0x1551   :  { %v374_v51 = vpop.permute.xlu0 %373 }
0x1552   :  { %735 = vst.msk [vmem:[%s1146_s3 + $0x6] sm:$0x3] %vm21_vm0, %v374_v51 }
0x1555   :  { %v538_v38 = vpop.permute.xlu0 %537 }
0x1556   :  { %743 = vst.msk [vmem:[%s1146_s3 + $0xa] sm:$0x3] %vm21_vm0, %v538_v38 }
0x15c0   :  { %v702_v0 = vpop.permute.xlu0 %701 }
0x15c1   :  { %751 = vst.msk [vmem:[%s1146_s3 + $0xe] sm:$0x3] %vm21_vm0, %v702_v0  ;;  %706 = vst.msk [vmem:[#allocation2] sm:$0x3] %vm21_vm0, %v702_v0 }
0x15c2   :  { %710 = vst.msk [vmem:[%s1147_s4] sm:$0x3] %vm21_vm0, %v702_v0 }

</bundles_post_ra>
